<compile_context>
chip_gen: v5e
topology: v5e:2x2
jax: 0.10.0
libtpu: 0.0.40
codegen_flags: <defaults>
</compile_context>

<pallas_src>
import math
import jax
import jax.numpy as jnp
from jax.experimental import pallas as pl
from jax.experimental.pallas import tpu as pltpu

WORD_SIZE = 256      # Encoder.word_size
HIDDEN_SIZE = 128    # Encoder.thought_size (decoder hidden_size)
VOCAB_SIZE = 256     # module-level VOCAB_SIZE (synthetic choice)

_WEIGHT_NAMES = ('w_ih_word', 'w_ih_ctx', 'w_hh', 'b_ih', 'b_hh',
                 'w_attn_h', 'w_attn_e', 'b_attn', 'v',
                 'w_word_h', 'w_word_c', 'b_word')

_STEP_KEYS = ('w_ih_word', 'w_ih_ctx', 'w_hh', 'b_ih', 'b_hh',
              'w_attn_h', 'v', 'w_word_h', 'w_word_c', 'b_word')


# ---------------------------------------------------------------------------
# shared math
# ---------------------------------------------------------------------------
def _attn_enc_proj(enc, w_attn_e, b_attn):
    """Step-invariant encoder projection for attention: (B,T,H) -> (B,T,H)."""
    B, T, H = enc.shape
    enc2d = enc.reshape(B * T, H)                                     # one 2-D MXU dot
    proj = jnp.dot(enc2d.astype(jnp.bfloat16), w_attn_e,
                   preferred_element_type=jnp.float32).reshape(B, T, H)
    return proj + b_attn


def _gru_attn_step(we, h_prev, ctx_prev, enc, enc_proj_b, w):
    """One decode step. Activations f32, weights bf16, MXU accumulates in f32."""
    B, H = h_prev.shape
    bf16, f32 = jnp.bfloat16, jnp.float32

    # ---- single-step GRU (PyTorch gate order r, z, n); input concat folded into split dots
    gi = (jnp.dot(we.astype(bf16), w['w_ih_word'], preferred_element_type=f32)
          + jnp.dot(ctx_prev.astype(bf16), w['w_ih_ctx'], preferred_element_type=f32)
          + w['b_ih'])                                                # (B, 3H)
    gh = jnp.dot(h_prev.astype(bf16), w['w_hh'], preferred_element_type=f32) + w['b_hh']
    r = jax.nn.sigmoid(gi[:, :H] + gh[:, :H])
    z = jax.nn.sigmoid(gi[:, H:2 * H] + gh[:, H:2 * H])
    n = jnp.tanh(gi[:, 2 * H:] + r * gh[:, 2 * H:])
    h_new = (1.0 - z) * n + z * h_prev                                # (B, H)

    # ---- Attn: score = v . tanh(W_attn [h_new ; enc_t] + b), concat split as well
    hid_proj = jnp.dot(h_new.astype(bf16), w['w_attn_h'],
                       preferred_element_type=f32)                    # (B, H)
    energy = jnp.tanh(hid_proj[:, None, :] + enc_proj_b)              # (B, T, H)
    scores = jnp.sum(energy * w['v'], axis=-1)                        # (B, T), lane reduce

    # softmax over T (F.softmax(..., dim=1)); EUP reciprocal
    m = jnp.max(scores, axis=1, keepdims=True)
    e = jnp.exp(scores - m)
    attn = e * pl.reciprocal(jnp.sum(e, axis=1, keepdims=True), approx=True)

    # context = attn_weights.bmm(encoder_outputs.transpose(0,1))
    #   -> VPU broadcast-multiply + sublane reduce (avoids tiny batched MXU matmuls)
    context = jnp.sum(attn[:, :, None] * enc, axis=1)                 # (B, H)

    # ---- word head: log_softmax(worder([h_new ; context]))
    logits = (jnp.dot(h_new.astype(bf16), w['w_word_h'], preferred_element_type=f32)
              + jnp.dot(context.astype(bf16), w['w_word_c'], preferred_element_type=f32)
              + w['b_word'])                                          # (B, V)
    lm = jnp.max(logits, axis=1, keepdims=True)
    lse = jnp.log(jnp.sum(jnp.exp(logits - lm), axis=1, keepdims=True)) + lm
    return logits - lse, h_new, context


# ---------------------------------------------------------------------------
# kernels
# ---------------------------------------------------------------------------
def decoder_step_kernel(we_ref, h0_ref, ctx0_ref, enc_ref, *rest):
    w_refs = dict(zip(_WEIGHT_NAMES, rest[:len(_WEIGHT_NAMES)]))
    word_ref, hid_ref, ctx_ref = rest[len(_WEIGHT_NAMES):]

    enc = enc_ref[...]
    enc_proj_b = _attn_enc_proj(enc, w_refs['w_attn_e'][...], w_refs['b_attn'][...])
    w = {k: w_refs[k][...] for k in _STEP_KEYS}

    logp, h_new, context = _gru_attn_step(
        we_ref[...], h0_ref[...], ctx0_ref[...], enc, enc_proj_b, w)
    word_ref[...] = logp
    hid_ref[...] = h_new
    ctx_ref[...] = context


def decoder_fused_kernel(we_ref, h0_ref, ctx0_ref, enc_ref, *rest):
    w_refs = dict(zip(_WEIGHT_NAMES, rest[:len(_WEIGHT_NAMES)]))
    word_ref, hid_ref, ctx_ref, h_scr, c_scr, ep_scr = rest[len(_WEIGHT_NAMES):]
    s = pl.program_id(0)

    @pl.when(s == 0)
    def _():
        h_scr[...] = h0_ref[...]
        c_scr[...] = ctx0_ref[...]
        # step-invariant encoder projection, computed once and reused every step
        ep_scr[...] = _attn_enc_proj(enc_ref[...], w_refs['w_attn_e'][...],
                                     w_refs['b_attn'][...])

    w = {k: w_refs[k][...] for k in _STEP_KEYS}
    logp, h_new, context = _gru_attn_step(
        we_ref[0], h_scr[...], c_scr[...], enc_ref[...], ep_scr[...], w)

    word_ref[0] = logp
    h_scr[...] = h_new
    c_scr[...] = context

    @pl.when(s == pl.num_programs(0) - 1)
    def _():
        hid_ref[...] = h_new
        ctx_ref[...] = context


# ---------------------------------------------------------------------------
# wrappers
# ---------------------------------------------------------------------------
def _pad_to(x, size, axis):
    pad = size - x.shape[axis]
    if pad <= 0:
        return x
    widths = [(0, 0)] * x.ndim
    widths[axis] = (0, pad)
    return jnp.pad(x, widths)


def _weight_args(params):
    return tuple(params[k] for k in _WEIGHT_NAMES)


def _cost_estimate(B, T, H, V, steps, enc_proj_hoisted):
    enc_proj = 2 * B * T * H * H
    per_flops = 2 * B * (WORD_SIZE * 3 * H + 2 * H * 3 * H      # GRU dots
                         + H * H                                 # attn hidden proj
                         + 2 * T * H                             # scores + context
                         + 2 * H * V)                            # word head
    if enc_proj_hoisted:
        total_flops = steps * per_flops + enc_proj
    else:
        total_flops = steps * (per_flops + enc_proj)
    per_trans = B * (3 * H + T * H + T + V)                      # sigmoid/tanh/exp
    weight_bytes = (2 * ((WORD_SIZE + 2 * H) * 3 * H + 2 * H * H + 2 * H * V)
                    + 4 * (2 * 3 * H + 2 * H + V))
    act_bytes = 4 * B * (WORD_SIZE + 2 * H + T * H + V + 2 * H)
    return pl.CostEstimate(flops=int(total_flops),
                           transcendentals=int(steps * per_trans),
                           bytes_accessed=int(weight_bytes + steps * act_bytes))


def decoder_forward(thoughts, word_embedded, encoder_outputs, decoder_context, params):
    """Single decode step (matches Decoder.forward, attention=True).
    thoughts (1,B,H), word_embedded viewable to (B, WORD), encoder_outputs (T,B,H),
    decoder_context (1,B,H). Returns word (B,1,V), hidden (1,B,H), context (1,B,H)."""
    T, B, H = encoder_outputs.shape
    B_pad = ((B + 7) // 8) * 8
    we = _pad_to(word_embedded.reshape(B, WORD_SIZE), B_pad, 0)
    h0 = _pad_to(thoughts.reshape(B, H), B_pad, 0)
    dctx = _pad_to(decoder_context.reshape(B, H), B_pad, 0)
    enc = _pad_to(jnp.transpose(encoder_outputs, (1, 0, 2)), B_pad, 0)   # (B_pad, T, H)

    vmem = pl.BlockSpec(memory_space=pltpu.MemorySpace.VMEM)
    word, hidden, context = pl.pallas_call(
        decoder_step_kernel,
        out_shape=(jax.ShapeDtypeStruct((B_pad, VOCAB_SIZE), jnp.float32),
                   jax.ShapeDtypeStruct((B_pad, H), jnp.float32),
                   jax.ShapeDtypeStruct((B_pad, H), jnp.float32)),
        in_specs=[vmem] * (4 + len(_WEIGHT_NAMES)),
        out_specs=(vmem, vmem, vmem),
        cost_estimate=_cost_estimate(B_pad, T, H, VOCAB_SIZE, 1, False),
    )(we, h0, dctx, enc, *_weight_args(params))

    word = word[:B].reshape(B, 1, VOCAB_SIZE)
    hidden = hidden[:B].reshape(1, B, H)
    context = context[:B].reshape(1, B, H)
    return word, hidden, context


def decoder_forward_fused(thoughts, word_embedded_steps, encoder_outputs,
                          decoder_context, params):
    """Fused multi-step decode (teacher-forced embeddings): grid over steps; all
    weights + encoder outputs resident in VMEM (constant index_map, "arbitrary"
    axis); hidden / context carried in VMEM scratch; encoder attention projection
    computed once at step 0."""
    S = word_embedded_steps.shape[0]
    T, B, H = encoder_outputs.shape
    B_pad = ((B + 7) // 8) * 8
    we = _pad_to(word_embedded_steps.reshape(S, B, WORD_SIZE), B_pad, 1)
    h0 = _pad_to(thoughts.reshape(B, H), B_pad, 0)
    dctx = _pad_to(decoder_context.reshape(B, H), B_pad, 0)
    enc = _pad_to(jnp.transpose(encoder_outputs, (1, 0, 2)), B_pad, 0)   # (B_pad, T, H)

    def full(shape):
        return pl.BlockSpec(shape, lambda s: (0,) * len(shape))

    weights = _weight_args(params)
    in_specs = ([pl.BlockSpec((1, B_pad, WORD_SIZE), lambda s: (s, 0, 0)),
                 full((B_pad, H)), full((B_pad, H)), full((B_pad, T, H))]
                + [full(w.shape) for w in weights])
    out_specs = (pl.BlockSpec((1, B_pad, VOCAB_SIZE), lambda s: (s, 0, 0)),
                 full((B_pad, H)), full((B_pad, H)))

    words, hidden, context = pl.pallas_call(
        decoder_fused_kernel,
        grid=(S,),
        out_shape=(jax.ShapeDtypeStruct((S, B_pad, VOCAB_SIZE), jnp.float32),
                   jax.ShapeDtypeStruct((B_pad, H), jnp.float32),
                   jax.ShapeDtypeStruct((B_pad, H), jnp.float32)),
        in_specs=in_specs,
        out_specs=out_specs,
        scratch_shapes=[pltpu.VMEM((B_pad, H), jnp.float32),
                        pltpu.VMEM((B_pad, H), jnp.float32),
                        pltpu.VMEM((B_pad, T, H), jnp.float32)],
        compiler_params=pltpu.CompilerParams(dimension_semantics=("arbitrary",)),
        cost_estimate=_cost_estimate(B_pad, T, H, VOCAB_SIZE, S, True),
    )(we, h0, dctx, enc, *weights)

    words = words[:, :B, :]                          # (S, B, V) log-probs
    hidden = hidden[:B].reshape(1, B, H)
    context = context[:B].reshape(1, B, H)
    return words, hidden, context


# ---------------------------------------------------------------------------
# parameters (pre-transposed / pre-split, weights bf16, biases f32)
# ---------------------------------------------------------------------------
def init_params(key, hidden_size=HIDDEN_SIZE, word_size=WORD_SIZE, vocab=VOCAB_SIZE):
    ks = jax.random.split(key, 9)
    H = hidden_size
    s_gru = 1.0 / math.sqrt(H)
    s_attn = 1.0 / math.sqrt(2 * H)
    s_word = 1.0 / math.sqrt(2 * H)
    u = lambda k, shape, s: jax.random.uniform(k, shape, jnp.float32, -s, s)
    bf = jnp.bfloat16
    # GRU weights stored (in_features, 3H); attn/word heads stored (in_features, out)
    w_ih = u(ks[0], (word_size + H, 3 * H), s_gru)
    w_hh = u(ks[1], (H, 3 * H), s_gru)
    w_attn = u(ks[4], (2 * H, H), s_attn)          # rows: [hidden ; encoder_output]
    w_word = u(ks[7], (2 * H, vocab), s_word)      # rows: [output ; context]
    return {
        'w_ih_word': w_ih[:word_size].astype(bf),
        'w_ih_ctx': w_ih[word_size:].astype(bf),
        'w_hh': w_hh.astype(bf),
        'b_ih': u(ks[2], (1, 3 * H), s_gru),
        'b_hh': u(ks[3], (1, 3 * H), s_gru),
        'w_attn_h': w_attn[:H].astype(bf),
        'w_attn_e': w_attn[H:].astype(bf),
        'b_attn': u(ks[5], (1, H), s_attn),
        'v': jax.random.normal(ks[6], (1, H), jnp.float32) * (1.0 / math.sqrt(H)),
        'w_word_h': w_word[:H].astype(bf),
        'w_word_c': w_word[H:].astype(bf),
        'b_word': u(ks[8], (1, vocab), s_word),
    }
    # TODO(synk): attention=False branch (plain GRU + Linear(H, V)) not emitted;
    # it is a strict subset of this kernel.


# ---------------------------------------------------------------------------
# pure-JAX f32 reference (same weight values, upcast) for correctness checking
# ---------------------------------------------------------------------------
def reference_step(we, h_prev, ctx_prev, enc_bth, params):
    p = {k: val.astype(jnp.float32) for k, val in params.items()}
    H = h_prev.shape[1]
    gi = we @ p['w_ih_word'] + ctx_prev @ p['w_ih_ctx'] + p['b_ih']
    gh = h_prev @ p['w_hh'] + p['b_hh']
    r = jax.nn.sigmoid(gi[:, :H] + gh[:, :H])
    z = jax.nn.sigmoid(gi[:, H:2 * H] + gh[:, H:2 * H])
    n = jnp.tanh(gi[:, 2 * H:] + r * gh[:, 2 * H:])
    h_new = (1.0 - z) * n + z * h_prev
    hid_proj = h_new @ p['w_attn_h']
    enc_proj = jnp.einsum('bth,hk->btk', enc_bth, p['w_attn_e'])
    energy = jnp.tanh(hid_proj[:, None, :] + enc_proj + p['b_attn'])
    scores = jnp.sum(energy * p['v'], axis=-1)
    attn = jax.nn.softmax(scores, axis=1)
    context = jnp.einsum('bt,bth->bh', attn, enc_bth)
    logits = h_new @ p['w_word_h'] + context @ p['w_word_c'] + p['b_word']
    return jax.nn.log_softmax(logits, axis=1), h_new, context


if __name__ == "__main__":
    key = jax.random.PRNGKey(0)
    kp, k1, k2, k3, k4 = jax.random.split(key, 5)

    B, T, S, H = 4, 8, 5, HIDDEN_SIZE
    params = init_params(kp)

    thoughts = jax.random.normal(k1, (1, B, H), jnp.float32)
    word_embedded_steps = jax.random.normal(k2, (S, B, WORD_SIZE), jnp.float32)
    encoder_outputs = jax.random.normal(k3, (T, B, H), jnp.float32)
    decoder_context = jax.random.normal(k4, (1, B, H), jnp.float32)

    # (a) single-step kernel iterated (matches Decoder.forward called per step)
    h, c = thoughts, decoder_context
    step_words = []
    for s in range(S):
        w, h, c = decoder_forward(h, word_embedded_steps[s], encoder_outputs, c, params)
        assert w.shape == (B, 1, VOCAB_SIZE)
        step_words.append(w[:, 0, :])
    step_words = jnp.stack(step_words, axis=0)                 # (S, B, V)

    # (b) fused multi-step kernel: weights + encoder projection resident across steps
    fused_words, fused_h, fused_c = decoder_forward_fused(
        thoughts, word_embedded_steps, encoder_outputs, decoder_context, params)
    jax.block_until_ready((step_words, h, c, fused_words, fused_h, fused_c))

    assert fused_words.shape == (S, B, VOCAB_SIZE)
    assert fused_h.shape == (1, B, H) and fused_c.shape == (1, B, H)
    assert bool(jnp.allclose(fused_words, step_words, atol=1e-3, rtol=1e-3))
    assert bool(jnp.allclose(fused_h, h, atol=1e-3, rtol=1e-3))
    assert bool(jnp.allclose(fused_c, c, atol=1e-3, rtol=1e-3))
    # log_softmax rows should sum to ~1 in prob space
    assert bool(jnp.allclose(jnp.sum(jnp.exp(fused_words), axis=-1), 1.0, atol=1e-3))

    # f32 pure-JAX reference with the same weight values (loose tol for bf16 matmuls)
    rh = thoughts.reshape(B, H)
    rc = decoder_context.reshape(B, H)
    enc_bth = jnp.transpose(encoder_outputs, (1, 0, 2))
    for s in range(S):
        rw, rh, rc = reference_step(word_embedded_steps[s], rh, rc, enc_bth, params)
    assert bool(jnp.allclose(fused_words[-1], rw, atol=0.1))

    print("KERNEL_OK")
</pallas_src>

<mosaic_0001>
module attributes {stable_mosaic.version = 11 : i64} {
  func.func @decoder_step_kernel(%arg0: memref<8x256xf32, #tpu.memory_space<vmem>>, %arg1: memref<8x128xf32, #tpu.memory_space<vmem>>, %arg2: memref<8x128xf32, #tpu.memory_space<vmem>>, %arg3: memref<8x8x128xf32, #tpu.memory_space<vmem>>, %arg4: memref<256x384xbf16, #tpu.memory_space<vmem>>, %arg5: memref<128x384xbf16, #tpu.memory_space<vmem>>, %arg6: memref<128x384xbf16, #tpu.memory_space<vmem>>, %arg7: memref<1x384xf32, #tpu.memory_space<vmem>>, %arg8: memref<1x384xf32, #tpu.memory_space<vmem>>, %arg9: memref<128x128xbf16, #tpu.memory_space<vmem>>, %arg10: memref<128x128xbf16, #tpu.memory_space<vmem>>, %arg11: memref<1x128xf32, #tpu.memory_space<vmem>>, %arg12: memref<1x128xf32, #tpu.memory_space<vmem>>, %arg13: memref<128x256xbf16, #tpu.memory_space<vmem>>, %arg14: memref<128x256xbf16, #tpu.memory_space<vmem>>, %arg15: memref<1x256xf32, #tpu.memory_space<vmem>>, %arg16: memref<8x256xf32, #tpu.memory_space<vmem>>, %arg17: memref<8x128xf32, #tpu.memory_space<vmem>>, %arg18: memref<8x128xf32, #tpu.memory_space<vmem>>) attributes {dimension_semantics = [], scalar_prefetch = 0 : i64, scratch_operands = 0 : i64, tpu.core_type = #tpu.core_type<tc>} {
    %c0 = arith.constant 0 : index
    %c0_0 = arith.constant 0 : index
    %c0_1 = arith.constant 0 : index
    %0 = vector.load %arg3[%c0, %c0_0, %c0_1] : memref<8x8x128xf32, #tpu.memory_space<vmem>>, vector<8x8x128xf32>
    %c0_2 = arith.constant 0 : index
    %c0_3 = arith.constant 0 : index
    %1 = vector.load %arg10[%c0_2, %c0_3] : memref<128x128xbf16, #tpu.memory_space<vmem>>, vector<128x128xbf16>
    %c0_4 = arith.constant 0 : index
    %c0_5 = arith.constant 0 : index
    %2 = vector.load %arg11[%c0_4, %c0_5] : memref<1x128xf32, #tpu.memory_space<vmem>>, vector<1x128xf32>
    %3 = vector.shape_cast %0 : vector<8x8x128xf32> to vector<64x128xf32>
    %4 = arith.truncf %3 : vector<64x128xf32> to vector<64x128xbf16>
    %cst = arith.constant dense<0.000000e+00> : vector<64x128xf32>
    %5 = tpu.matmul %4, %1, %cst {dimension_numbers = #tpu.dot_dimension_numbers<[1], [0], [0], [1], [0, 0, 1, 1], [], []>} : vector<64x128xbf16>, vector<128x128xbf16>, vector<64x128xf32> -> vector<64x128xf32>
    %6 = vector.shape_cast %5 : vector<64x128xf32> to vector<8x8x128xf32>
    %7 = vector.shape_cast %2 : vector<1x128xf32> to vector<1x1x128xf32>
    %8 = vector.broadcast %7 : vector<1x1x128xf32> to vector<8x8x128xf32>
    %9 = arith.addf %6, %8 : vector<8x8x128xf32>
    %c0_6 = arith.constant 0 : index
    %c0_7 = arith.constant 0 : index
    %10 = vector.load %arg4[%c0_6, %c0_7] : memref<256x384xbf16, #tpu.memory_space<vmem>>, vector<256x384xbf16>
    %c0_8 = arith.constant 0 : index
    %c0_9 = arith.constant 0 : index
    %11 = vector.load %arg5[%c0_8, %c0_9] : memref<128x384xbf16, #tpu.memory_space<vmem>>, vector<128x384xbf16>
    %c0_10 = arith.constant 0 : index
    %c0_11 = arith.constant 0 : index
    %12 = vector.load %arg6[%c0_10, %c0_11] : memref<128x384xbf16, #tpu.memory_space<vmem>>, vector<128x384xbf16>
    %c0_12 = arith.constant 0 : index
    %c0_13 = arith.constant 0 : index
    %13 = vector.load %arg7[%c0_12, %c0_13] : memref<1x384xf32, #tpu.memory_space<vmem>>, vector<1x384xf32>
    %c0_14 = arith.constant 0 : index
    %c0_15 = arith.constant 0 : index
    %14 = vector.load %arg8[%c0_14, %c0_15] : memref<1x384xf32, #tpu.memory_space<vmem>>, vector<1x384xf32>
    %c0_16 = arith.constant 0 : index
    %c0_17 = arith.constant 0 : index
    %15 = vector.load %arg9[%c0_16, %c0_17] : memref<128x128xbf16, #tpu.memory_space<vmem>>, vector<128x128xbf16>
    %c0_18 = arith.constant 0 : index
    %c0_19 = arith.constant 0 : index
    %16 = vector.load %arg12[%c0_18, %c0_19] : memref<1x128xf32, #tpu.memory_space<vmem>>, vector<1x128xf32>
    %c0_20 = arith.constant 0 : index
    %c0_21 = arith.constant 0 : index
    %17 = vector.load %arg13[%c0_20, %c0_21] : memref<128x256xbf16, #tpu.memory_space<vmem>>, vector<128x256xbf16>
    %c0_22 = arith.constant 0 : index
    %c0_23 = arith.constant 0 : index
    %18 = vector.load %arg14[%c0_22, %c0_23] : memref<128x256xbf16, #tpu.memory_space<vmem>>, vector<128x256xbf16>
    %c0_24 = arith.constant 0 : index
    %c0_25 = arith.constant 0 : index
    %19 = vector.load %arg15[%c0_24, %c0_25] : memref<1x256xf32, #tpu.memory_space<vmem>>, vector<1x256xf32>
    %c0_26 = arith.constant 0 : index
    %c0_27 = arith.constant 0 : index
    %20 = vector.load %arg0[%c0_26, %c0_27] : memref<8x256xf32, #tpu.memory_space<vmem>>, vector<8x256xf32>
    %c0_28 = arith.constant 0 : index
    %c0_29 = arith.constant 0 : index
    %21 = vector.load %arg1[%c0_28, %c0_29] : memref<8x128xf32, #tpu.memory_space<vmem>>, vector<8x128xf32>
    %c0_30 = arith.constant 0 : index
    %c0_31 = arith.constant 0 : index
    %22 = vector.load %arg2[%c0_30, %c0_31] : memref<8x128xf32, #tpu.memory_space<vmem>>, vector<8x128xf32>
    %23 = arith.truncf %20 : vector<8x256xf32> to vector<8x256xbf16>
    %cst_32 = arith.constant dense<0.000000e+00> : vector<8x384xf32>
    %24 = tpu.matmul %23, %10, %cst_32 {dimension_numbers = #tpu.dot_dimension_numbers<[1], [0], [0], [1], [0, 0, 1, 1], [], []>} : vector<8x256xbf16>, vector<256x384xbf16>, vector<8x384xf32> -> vector<8x384xf32>
    %25 = arith.truncf %22 : vector<8x128xf32> to vector<8x128xbf16>
    %cst_33 = arith.constant dense<0.000000e+00> : vector<8x384xf32>
    %26 = tpu.matmul %25, %11, %cst_33 {dimension_numbers = #tpu.dot_dimension_numbers<[1], [0], [0], [1], [0, 0, 1, 1], [], []>} : vector<8x128xbf16>, vector<128x384xbf16>, vector<8x384xf32> -> vector<8x384xf32>
    %27 = arith.addf %24, %26 : vector<8x384xf32>
    %28 = vector.broadcast %13 : vector<1x384xf32> to vector<8x384xf32>
    %29 = arith.addf %27, %28 : vector<8x384xf32>
    %30 = arith.truncf %21 : vector<8x128xf32> to vector<8x128xbf16>
    %cst_34 = arith.constant dense<0.000000e+00> : vector<8x384xf32>
    %31 = tpu.matmul %30, %12, %cst_34 {dimension_numbers = #tpu.dot_dimension_numbers<[1], [0], [0], [1], [0, 0, 1, 1], [], []>} : vector<8x128xbf16>, vector<128x384xbf16>, vector<8x384xf32> -> vector<8x384xf32>
    %32 = vector.broadcast %14 : vector<1x384xf32> to vector<8x384xf32>
    %33 = arith.addf %31, %32 : vector<8x384xf32>
    %34 = vector.extract_strided_slice %29 {offsets = [0, 0], sizes = [8, 128], strides = [1, 1]} : vector<8x384xf32> to vector<8x128xf32>
    %35 = vector.extract_strided_slice %33 {offsets = [0, 0], sizes = [8, 128], strides = [1, 1]} : vector<8x384xf32> to vector<8x128xf32>
    %36 = arith.addf %34, %35 : vector<8x128xf32>
    %37 = arith.negf %36 : vector<8x128xf32>
    %38 = math.exp %37 : vector<8x128xf32>
    %cst_35 = arith.constant 1.000000e+00 : f32
    %39 = vector.broadcast %cst_35 : f32 to vector<8x128xf32>
    %40 = arith.addf %39, %38 : vector<8x128xf32>
    %41 = arith.divf %39, %40 : vector<8x128xf32>
    %42 = vector.extract_strided_slice %29 {offsets = [0, 128], sizes = [8, 128], strides = [1, 1]} : vector<8x384xf32> to vector<8x128xf32>
    %43 = vector.extract_strided_slice %33 {offsets = [0, 128], sizes = [8, 128], strides = [1, 1]} : vector<8x384xf32> to vector<8x128xf32>
    %44 = arith.addf %42, %43 : vector<8x128xf32>
    %45 = arith.negf %44 : vector<8x128xf32>
    %46 = math.exp %45 : vector<8x128xf32>
    %cst_36 = arith.constant 1.000000e+00 : f32
    %47 = vector.broadcast %cst_36 : f32 to vector<8x128xf32>
    %48 = arith.addf %47, %46 : vector<8x128xf32>
    %49 = arith.divf %47, %48 : vector<8x128xf32>
    %50 = vector.extract_strided_slice %29 {offsets = [0, 256], sizes = [8, 128], strides = [1, 1]} : vector<8x384xf32> to vector<8x128xf32>
    %51 = vector.extract_strided_slice %33 {offsets = [0, 256], sizes = [8, 128], strides = [1, 1]} : vector<8x384xf32> to vector<8x128xf32>
    %52 = arith.mulf %41, %51 : vector<8x128xf32>
    %53 = arith.addf %50, %52 : vector<8x128xf32>
    %54 = math.tanh %53 : vector<8x128xf32>
    %cst_37 = arith.constant 1.000000e+00 : f32
    %55 = vector.broadcast %cst_37 : f32 to vector<8x128xf32>
    %56 = arith.subf %55, %49 : vector<8x128xf32>
    %57 = arith.mulf %56, %54 : vector<8x128xf32>
    %58 = arith.mulf %49, %21 : vector<8x128xf32>
    %59 = arith.addf %57, %58 : vector<8x128xf32>
    %60 = arith.truncf %59 : vector<8x128xf32> to vector<8x128xbf16>
    %cst_38 = arith.constant dense<0.000000e+00> : vector<8x128xf32>
    %61 = tpu.matmul %60, %15, %cst_38 {dimension_numbers = #tpu.dot_dimension_numbers<[1], [0], [0], [1], [0, 0, 1, 1], [], []>} : vector<8x128xbf16>, vector<128x128xbf16>, vector<8x128xf32> -> vector<8x128xf32>
    %62 = vector.shape_cast %61 : vector<8x128xf32> to vector<8x1x128xf32>
    %63 = vector.broadcast %62 : vector<8x1x128xf32> to vector<8x8x128xf32>
    %64 = arith.addf %63, %9 : vector<8x8x128xf32>
    %65 = math.tanh %64 : vector<8x8x128xf32>
    %66 = vector.shape_cast %16 : vector<1x128xf32> to vector<1x1x128xf32>
    %67 = vector.broadcast %66 : vector<1x1x128xf32> to vector<8x8x128xf32>
    %68 = arith.mulf %65, %67 : vector<8x8x128xf32>
    %cst_39 = arith.constant dense<0.000000e+00> : vector<8x8xf32>
    %69 = vector.multi_reduction <add>, %68, %cst_39 [2] : vector<8x8x128xf32> to vector<8x8xf32>
    %cst_40 = arith.constant dense<0xFF800000> : vector<8xf32>
    %70 = vector.multi_reduction <maximumf>, %69, %cst_40 [1] : vector<8x8xf32> to vector<8xf32>
    %71 = vector.shape_cast %70 : vector<8xf32> to vector<8x1xf32>
    %72 = vector.broadcast %71 : vector<8x1xf32> to vector<8x8xf32>
    %73 = arith.subf %69, %72 : vector<8x8xf32>
    %74 = math.exp %73 : vector<8x8xf32>
    %cst_41 = arith.constant dense<0.000000e+00> : vector<8xf32>
    %75 = vector.multi_reduction <add>, %74, %cst_41 [1] : vector<8x8xf32> to vector<8xf32>
    %76 = vector.shape_cast %75 : vector<8xf32> to vector<8x1xf32>
    %77 = tpu.reciprocal %76 {approx = true} : vector<8x1xf32> -> vector<8x1xf32>
    %78 = vector.broadcast %77 : vector<8x1xf32> to vector<8x8xf32>
    %79 = arith.mulf %74, %78 : vector<8x8xf32>
    %80 = vector.shape_cast %79 : vector<8x8xf32> to vector<8x8x1xf32>
    %81 = vector.broadcast %80 : vector<8x8x1xf32> to vector<8x8x128xf32>
    %82 = arith.mulf %81, %0 : vector<8x8x128xf32>
    %cst_42 = arith.constant dense<0.000000e+00> : vector<8x128xf32>
    %83 = vector.multi_reduction <add>, %82, %cst_42 [1] : vector<8x8x128xf32> to vector<8x128xf32>
    %84 = arith.truncf %59 : vector<8x128xf32> to vector<8x128xbf16>
    %cst_43 = arith.constant dense<0.000000e+00> : vector<8x256xf32>
    %85 = tpu.matmul %84, %17, %cst_43 {dimension_numbers = #tpu.dot_dimension_numbers<[1], [0], [0], [1], [0, 0, 1, 1], [], []>} : vector<8x128xbf16>, vector<128x256xbf16>, vector<8x256xf32> -> vector<8x256xf32>
    %86 = arith.truncf %83 : vector<8x128xf32> to vector<8x128xbf16>
    %cst_44 = arith.constant dense<0.000000e+00> : vector<8x256xf32>
    %87 = tpu.matmul %86, %18, %cst_44 {dimension_numbers = #tpu.dot_dimension_numbers<[1], [0], [0], [1], [0, 0, 1, 1], [], []>} : vector<8x128xbf16>, vector<128x256xbf16>, vector<8x256xf32> -> vector<8x256xf32>
    %88 = arith.addf %85, %87 : vector<8x256xf32>
    %89 = vector.broadcast %19 : vector<1x256xf32> to vector<8x256xf32>
    %90 = arith.addf %88, %89 : vector<8x256xf32>
    %cst_45 = arith.constant dense<0xFF800000> : vector<8xf32>
    %91 = vector.multi_reduction <maximumf>, %90, %cst_45 [1] : vector<8x256xf32> to vector<8xf32>
    %92 = vector.shape_cast %91 : vector<8xf32> to vector<8x1xf32>
    %93 = vector.broadcast %92 : vector<8x1xf32> to vector<8x256xf32>
    %94 = arith.subf %90, %93 : vector<8x256xf32>
    %95 = math.exp %94 : vector<8x256xf32>
    %cst_46 = arith.constant dense<0.000000e+00> : vector<8xf32>
    %96 = vector.multi_reduction <add>, %95, %cst_46 [1] : vector<8x256xf32> to vector<8xf32>
    %97 = vector.shape_cast %96 : vector<8xf32> to vector<8x1xf32>
    %98 = math.log %97 : vector<8x1xf32>
    %99 = arith.addf %98, %92 : vector<8x1xf32>
    %100 = vector.broadcast %99 : vector<8x1xf32> to vector<8x256xf32>
    %101 = arith.subf %90, %100 : vector<8x256xf32>
    %c0_47 = arith.constant 0 : index
    %c0_48 = arith.constant 0 : index
    %102 = vector.load %arg16[%c0_47, %c0_48] : memref<8x256xf32, #tpu.memory_space<vmem>>, vector<8x256xf32>
    tpu.vector_store %arg16[%c0_47, %c0_48], %101 {strides = array<i32>} : memref<8x256xf32, #tpu.memory_space<vmem>>, vector<8x256xf32>,
    %c0_49 = arith.constant 0 : index
    %c0_50 = arith.constant 0 : index
    %103 = vector.load %arg17[%c0_49, %c0_50] : memref<8x128xf32, #tpu.memory_space<vmem>>, vector<8x128xf32>
    tpu.vector_store %arg17[%c0_49, %c0_50], %59 {strides = array<i32>} : memref<8x128xf32, #tpu.memory_space<vmem>>, vector<8x128xf32>,
    %c0_51 = arith.constant 0 : index
    %c0_52 = arith.constant 0 : index
    %104 = vector.load %arg18[%c0_51, %c0_52] : memref<8x128xf32, #tpu.memory_space<vmem>>, vector<8x128xf32>
    tpu.vector_store %arg18[%c0_51, %c0_52], %83 {strides = array<i32>} : memref<8x128xf32, #tpu.memory_space<vmem>>, vector<8x128xf32>,
    return
  }
}

</mosaic_0001>

<bundles_post_ra>
// kernel: tpu_custom_call.1
= control target key start
LH: loop header
LB: loop body
LE: loop exit
PB: predicated region body
PF: predicated region fallthrough
CT: control target
= control target key end

     0   :  { %s3459_s0 = inlined_call_operand.hbm [shape: f32[8,256], index: 0, kind: input, shape index: {}]   ;;  %s3460_s1 = inlined_call_operand.hbm [shape: f32[8,128], index: 1, kind: input, shape index: {}]   ;;  %s3461_s2 = inlined_call_operand.hbm [shape: f32[8,128], index: 2, kind: input, shape index: {}]   ;;  %s3462_s3 = inlined_call_operand.hbm [shape: f32[8,8,128], index: 3, kind: input, shape index: {}]   ;;  %s3463_s4 = inlined_call_operand.hbm [shape: bf16[256,384], index: 4, kind: input, shape index: {}]   ;;  %s3464_s5 = inlined_call_operand.hbm [shape: bf16[128,384], index: 5, kind: input, shape index: {}]   ;;  %s3465_s6 = inlined_call_operand.hbm [shape: bf16[128,384], index: 6, kind: input, shape index: {}]   ;;  %s3466_s7 = inlined_call_operand.vmem [shape: f32[1,384], index: 7, kind: input, shape index: {}]   ;;  %s3467_s8 = inlined_call_operand.vmem [shape: f32[1,384], index: 8, kind: input, shape index: {}]   ;;  %s3468_s9 = inlined_call_operand.hbm [shape: bf16[128,128], index: 9, kind: input, shape index: {}]   ;;  %s3469_s10 = inlined_call_operand.hbm [shape: bf16[128,128], index: 10, kind: input, shape index: {}]   ;;  %s3470_s11 = inlined_call_operand.vmem [shape: f32[1,128], index: 11, kind: input, shape index: {}]   ;;  %s3471_s12 = inlined_call_operand.vmem [shape: f32[1,128], index: 12, kind: input, shape index: {}]   ;;  %s3472_s13 = inlined_call_operand.hbm [shape: bf16[128,256], index: 13, kind: input, shape index: {}]   ;;  %s3473_s14 = inlined_call_operand.hbm [shape: bf16[128,256], index: 14, kind: input, shape index: {}]   ;;  %s3474_s15 = inlined_call_operand.vmem [shape: f32[1,256], index: 15, kind: input, shape index: {}]   ;;  %s3475_s16 = inlined_call_operand.hbm [shape: f32[8,256], index: 16, kind: output, shape index: {0}]   ;;  %s3476_s17 = inlined_call_operand.hbm [shape: f32[8,128], index: 17, kind: output, shape index: {1}]   ;;  %s3477_s18 = inlined_call_operand.hbm [shape: f32[8,128], index: 18, kind: output, shape index: {2}]  }
   0x1   :  { %3482 = sst [smem:[#allocation32_spill]] %s3459_s0 }
   0x2   :  { %3483 = sst [smem:[#allocation33_spill]] %s3460_s1 }
   0x3   :  { %3484 = sst [smem:[#allocation34_spill]] %s3461_s2 }
   0x4   :  { %24 = vsyncpa [#allocation3], 0 }
   0x5   :  { %25 = vsyncpa [#allocation6], 0 }
   0x6   :  { %26 = vsyncpa [#allocation9], 0 }
   0x7   :  { %27 = vsyncpa [#allocation12], 0 }
   0x8   :  { %28 = vsyncpa [#allocation15], 0 }
   0x9   :  { %29 = vsyncpa [#allocation18], 0 }
   0xa   :  { %30 = vsyncpa [#allocation4], 0  ;;  %s3485_s29 = sld [smem:[#allocation33_spill]] }
  0x10   :  { %s48_s30 = sshll.u32 %s3485_s29, 4  ;;  %s49_s30 = int_to_ptr.hbm [resolvable:$true] %s48_s30 }
  0x11   :  { %31 = vsyncpa [#allocation22], 0  ;;  %s3140_s0 = smov [#allocation5]   ;;  %s69_s21 = sshll.u32 %s3462_s3, 4  ;;  %s70_s21 = int_to_ptr.hbm [resolvable:$true] %s69_s21 }
  0x12   :  { %s50_s19 = sshll.u32 %s3140_s0, 4  ;;  %s3141_s22 = smov [#allocation8]   ;;  %s51_s19 = int_to_ptr.vmem [resolvable:$true] %s50_s19 }
  0x13   :  { %53 = dma.hbm_to_vmem [thread:$0]  %s49_s30, 128, %s51_s19, [#allocation6]  }
  0x14   :  { %s71_s2 = sshll.u32 %s3141_s22, 4  ;;  %s3481_s23 = smov 128   ;;  %s72_s2 = int_to_ptr.vmem [resolvable:$true] %s71_s2 }
  0x15   :  { %s3143_s24 = smov 8   ;;  %s95_s27 = sshll.u32 %s3464_s5, 4  ;;  %s96_s27 = int_to_ptr.hbm [resolvable:$true] %s95_s27 }
  0x16   :  { %77 = dma.hbm_to_vmem [thread:$0]  %s70_s21, 1024, %s72_s2, [#allocation9], %s3481_s23, %s3481_s23, %s3143_s24  }
  0x17   :  { %s3144_s28 = smov [#allocation11]   ;;  %s125_s0 = sshll.u32 %s3468_s9, 4  ;;  %s126_s0 = int_to_ptr.hbm [resolvable:$true] %s125_s0 }
  0x18   :  { %s97_s29 = sshll.u32 %s3144_s28, 4  ;;  %s3478_s19 = smov 192   ;;  %s98_s29 = int_to_ptr.vmem [resolvable:$true] %s97_s29 }
  0x19   :  { %s3146_s1 = smov 12   ;;  %s3147_s20 = smov [#allocation14]  }
  0x1a   :  { %103 = dma.hbm_to_vmem [thread:$0]  %s96_s27, 3072, %s98_s29, [#allocation12], %s3478_s19, %s3478_s19, %s3146_s1  }
  0x1b   :  { %s127_s21 = sshll.u32 %s3147_s20, 4  ;;  %s3480_s22 = smov 64   ;;  %s128_s21 = int_to_ptr.vmem [resolvable:$true] %s127_s21 }
  0x1c   :  { %s3149_s5 = smov 4   ;;  %s155_s9 = sshll.u32 %s3472_s13, 4  ;;  %s156_s9 = int_to_ptr.hbm [resolvable:$true] %s155_s9 }
  0x1d   :  { %133 = dma.hbm_to_vmem [thread:$0]  %s126_s0, 1024, %s128_s21, [#allocation15], %s3480_s22, %s3480_s22, %s3149_s5  }
  0x1e   :  { %s3150_s26 = smov [#allocation17]   ;;  %s3486_s29 = sld [smem:[#allocation32_spill]] }
  0x1f   :  { %s157_s28 = sshll.u32 %s3150_s26, 4  ;;  %s3151_s20 = smov [#allocation2]   ;;  %s158_s28 = int_to_ptr.vmem [resolvable:$true] %s157_s28 }
  0x20   :  { %163 = dma.hbm_to_vmem [thread:$0]  %s156_s9, 2048, %s158_s28, [#allocation18], %s3481_s23, %s3481_s23, %s3143_s24  }
  0x21   :  { %s39_s19 = sshll.u32 %s3151_s20, 4  ;;  %s3487_s22 = sld [smem:[#allocation34_spill]]  ;;  %s40_s19 = int_to_ptr.vmem [resolvable:$true] %s39_s19 }
  0x22   :  { %s82_s26 = sshll.u32 %s3463_s4, 4  ;;  %s3152_s3 = smov [#allocation7]   ;;  %s83_s26 = int_to_ptr.hbm [resolvable:$true] %s82_s26 }
  0x23   :  { %s61_s27 = sshll.u32 %s3152_s3, 4  ;;  %s3153_s9 = smov [#allocation10]   ;;  %s62_s27 = int_to_ptr.vmem [resolvable:$true] %s61_s27 }
  0x24   :  { %s37_s30 = sshll.u32 %s3486_s29, 4  ;;  %s84_s28 = sshll.u32 %s3153_s9, 4  ;;  %s38_s30 = int_to_ptr.hbm [resolvable:$true] %s37_s30  ;;  %s85_s28 = int_to_ptr.vmem [resolvable:$true] %s84_s28 }
  0x25   :  { %42 = dma.hbm_to_vmem [thread:$0]  %s38_s30, 256, %s40_s19, [#allocation3]  }
  0x26   :  { %s108_s23 = sshll.u32 %s3465_s6, 4  ;;  %s138_s4 = sshll.u32 %s3469_s10, 4  ;;  %s109_s23 = int_to_ptr.hbm [resolvable:$true] %s108_s23  ;;  %s139_s4 = int_to_ptr.hbm [resolvable:$true] %s138_s4 }
  0x27   :  { %s59_s2 = sshll.u32 %s3487_s22, 4  ;;  %s3488_s22 = smov 192   ;;  %s60_s2 = int_to_ptr.hbm [resolvable:$true] %s59_s2 }
  0x28   :  { %64 = dma.hbm_to_vmem [thread:$0]  %s60_s2, 128, %s62_s27, [#allocation6]  }
  0x29   :  { %90 = dma.hbm_to_vmem [thread:$0]  %s83_s26, 6144, %s85_s28, [#allocation9], %s3488_s22, %s3488_s22, %s3146_s1  }
  0x2a   :  { %s3154_s0 = smov [#allocation13]   ;;  %s3155_s2 = smov [#allocation16]  }
  0x2b   :  { %s110_s21 = sshll.u32 %s3154_s0, 4  ;;  %s140_s6 = sshll.u32 %s3155_s2, 4  ;;  %s111_s21 = int_to_ptr.vmem [resolvable:$true] %s110_s21  ;;  %s141_s6 = int_to_ptr.vmem [resolvable:$true] %s140_s6 }
  0x2c   :  { %116 = dma.hbm_to_vmem [thread:$0]  %s109_s23, 3072, %s111_s21, [#allocation12], %s3488_s22, %s3488_s22, %s3146_s1  }
  0x2d   :  { %s168_s3 = sshll.u32 %s3473_s14, 4  ;;  %s3489_s26 = smov 64   ;;  %s169_s3 = int_to_ptr.hbm [resolvable:$true] %s168_s3 }
  0x2e   :  { %146 = dma.hbm_to_vmem [thread:$0]  %s139_s4, 1024, %s141_s6, [#allocation15], %s3489_s26, %s3489_s26, %s3149_s5  }
  0x2f   :  { %s3156_s10 = smov [#allocation19]   ;;  %s3490_s9 = smov 128  }
  0x30   :  { %s170_s27 = sshll.u32 %s3156_s10, 4  ;;  %s171_s27 = int_to_ptr.vmem [resolvable:$true] %s170_s27 }
  0x31   :  { %176 = dma.hbm_to_vmem [thread:$0]  %s169_s3, 2048, %s171_s27, [#allocation18], %s3490_s9, %s3490_s9, %s3143_s24  }
  0x32   :  { %3124 = dma.done.wait [#allocation3], 256  }
  0x33   :  { %3125 = vsyncadd [#allocation3], 4294967040 }
  0x34   :  { %3126 = dma.done.wait [#allocation6], 256  }
  0x35   :  { %3127 = vsyncadd [#allocation6], 4294967040 }
  0x36   :  { %3128 = dma.done.wait [#allocation9], 7168  }
  0x37   :  { %3129 = vsyncadd [#allocation9], 4294960128 }
  0x38   :  { %3130 = dma.done.wait [#allocation12], 6144  }
  0x39   :  { %3131 = vsyncadd [#allocation12], 4294961152 }
  0x3a   :  { %3132 = dma.done.wait [#allocation15], 2048  }
  0x3b   :  { %3133 = vsyncadd [#allocation15], 4294965248 }
  0x3c   :  { %3134 = dma.done.wait [#allocation18], 4096  }
  0x3d   :  { %3135 = vsyncadd [#allocation18], 4294963200  ;;  %v2567_v0 = vld [vmem:[#allocation16 + $0x38] sm:$0xff]  ;;  %v2100_v1 = vld [vmem:[#allocation11 + $0xa8] sm:$0xf]  ;;  %vm1407_vm8 = vcmask 1041409  }
  0x3e   :  { %v2638_v2 = vld [vmem:[#allocation11 + $0xb0] sm:$0xf0]  ;;  %v2637_v4 = vld [vmem:[#allocation11 + $0xac] sm:$0xf]  ;;  %v2102_v5 = vld [vmem:[#allocation11 + $0xb4] sm:$0xf0]  ;;  %300 = vmatpush.bf16.msra.mxu0 %v2567_v0 }
  0x3f   :  { %v2101_v3 = vor.u32 %v2638_v2, %v2100_v1  ;;  %v2108_v6 = vld [vmem:[#allocation11 + $0xb0] sm:$0xf]  ;;  %v2105_v7 = vor.u32 %v2637_v4, %v2102_v5  ;;  %v2639_v8 = vld [vmem:[#allocation11 + $0xb8] sm:$0xf0]  ;;  %v2634_v13 = vld [vmem:[#allocation11 + $0x94] sm:$0xf] }
  0x40   :  { %v2566_v9 = vld [vmem:[#allocation16 + $0x30] sm:$0xff]  ;;  %v2109_v11 = vor.u32 %v2639_v8, %v2108_v6  ;;  %v2635_v12 = vld [vmem:[#allocation11 + $0x98] sm:$0xf0]  ;;  %v2090_v14 = vld [vmem:[#allocation11 + $0x9c] sm:$0xf0]  ;;  %vm1409_vm9 = vcmask 1042434  }
  0x41   :  { %v2088_v10 = vld [vmem:[#allocation11 + $0x90] sm:$0xf]  ;;  %655 = vmatpush.bf16.msra.mxu1 %v2101_v3  ;;  %668 = vmatpush.bf16.msra.mxu2 %v2105_v7  ;;  %v2093_v16 = vor.u32 %v2634_v13, %v2090_v14  ;;  %v2096_v17 = vld [vmem:[#allocation11 + $0x98] sm:$0xf]  ;;  %v2636_v18 = vld [vmem:[#allocation11 + $0xa0] sm:$0xf0] }
  0x42   :  { %v2089_v15 = vor.u32 %v2635_v12, %v2088_v10  ;;  %v2565_v19 = vld [vmem:[#allocation16 + $0x28] sm:$0xff]  ;;  %681 = vmatpush.bf16.msra.mxu3 %v2109_v11  ;;  %v2097_v20 = vor.u32 %v2636_v18, %v2096_v17  ;;  %v2076_v21 = vld [vmem:[#allocation11 + $0x78] sm:$0xf]  ;;  %v2632_v22 = vld [vmem:[#allocation11 + $0x80] sm:$0xf0]  ;;  %301 = vmatpush.bf16.msra.mxu0 %v2566_v9  ;;  %vm1411_vm10 = vcmask 1043459  }
  0x43   :  { %v2631_v23 = vld [vmem:[#allocation11 + $0x7c] sm:$0xf]  ;;  %v2078_v24 = vld [vmem:[#allocation11 + $0x84] sm:$0xf0]  ;;  %v2084_v25 = vld [vmem:[#allocation11 + $0x80] sm:$0xf]  ;;  %v2077_v27 = vor.u32 %v2632_v22, %v2076_v21 }
  0x44   :  { %v2633_v26 = vld [vmem:[#allocation11 + $0x88] sm:$0xf0]  ;;  %v2081_v28 = vor.u32 %v2631_v23, %v2078_v24  ;;  %v2064_v29 = vld [vmem:[#allocation11 + $0x60] sm:$0xf]  ;;  %v2628_v32 = vld [vmem:[#allocation11 + $0x64] sm:$0xf] }
  0x45   :  { %656 = vmatpush.bf16.msra.mxu1 %v2089_v15  ;;  %669 = vmatpush.bf16.msra.mxu2 %v2093_v16  ;;  %v2629_v30 = vld [vmem:[#allocation11 + $0x68] sm:$0xf0]  ;;  %v2085_v31 = vor.u32 %v2633_v26, %v2084_v25  ;;  %v2066_v33 = vld [vmem:[#allocation11 + $0x6c] sm:$0xf0]  ;;  %v2564_v34 = vld [vmem:[#allocation16 + $0x20] sm:$0xff]  ;;  %vm1413_vm11 = vcmask 1044484  }
  0x46   :  { %682 = vmatpush.bf16.msra.mxu3 %v2097_v20  ;;  %302 = vmatpush.bf16.msra.mxu0 %v2565_v19  ;;  %v2072_v35 = vld [vmem:[#allocation11 + $0x68] sm:$0xf]  ;;  %v2630_v36 = vld [vmem:[#allocation11 + $0x70] sm:$0xf0]  ;;  %v2065_v37 = vor.u32 %v2629_v30, %v2064_v29  ;;  %v2069_v38 = vor.u32 %v2628_v32, %v2066_v33  ;;  %v2625_v42 = vld [vmem:[#allocation11 + $0x4c] sm:$0xf] }
  0x47   :  { %v2052_v39 = vld [vmem:[#allocation11 + $0x48] sm:$0xf]  ;;  %v2626_v40 = vld [vmem:[#allocation11 + $0x50] sm:$0xf0]  ;;  %v2073_v41 = vor.u32 %v2630_v36, %v2072_v35  ;;  %v2054_v43 = vld [vmem:[#allocation11 + $0x54] sm:$0xf0] }
  0x48   :  { %v2563_v44 = vld [vmem:[#allocation16 + $0x18] sm:$0xff]  ;;  %v2060_v45 = vld [vmem:[#allocation11 + $0x50] sm:$0xf]  ;;  %v2053_v47 = vor.u32 %v2626_v40, %v2052_v39  ;;  %v2057_v48 = vor.u32 %v2625_v42, %v2054_v43  ;;  %v2622_v52 = vld [vmem:[#allocation11 + $0x34] sm:$0xf]  ;;  %vm1415_vm12 = vcmask 1045509  }
  0x49   :  { %657 = vmatpush.bf16.msra.mxu1 %v2077_v27  ;;  %670 = vmatpush.bf16.msra.mxu2 %v2081_v28  ;;  %v2627_v46 = vld [vmem:[#allocation11 + $0x58] sm:$0xf0]  ;;  %v2040_v49 = vld [vmem:[#allocation11 + $0x30] sm:$0xf]  ;;  %v2042_v53 = vld [vmem:[#allocation11 + $0x3c] sm:$0xf0] }
  0x4a   :  { %683 = vmatpush.bf16.msra.mxu3 %v2085_v31  ;;  %303 = vmatpush.bf16.msra.mxu0 %v2564_v34  ;;  %v2623_v50 = vld [vmem:[#allocation11 + $0x38] sm:$0xf0]  ;;  %v2061_v51 = vor.u32 %v2627_v46, %v2060_v45  ;;  %v2562_v54 = vld [vmem:[#allocation16 + $0x10] sm:$0xff]  ;;  %v2048_v55 = vld [vmem:[#allocation11 + $0x38] sm:$0xf]  ;;  %v2045_v58 = vor.u32 %v2622_v52, %v2042_v53  ;;  %vm1417_vm13 = vcmask 1046534  }
  0x4b   :  { %v2624_v56 = vld [vmem:[#allocation11 + $0x40] sm:$0xf0]  ;;  %v2041_v57 = vor.u32 %v2623_v50, %v2040_v49  ;;  %v2028_v59 = vld [vmem:[#allocation11 + $0x18] sm:$0xf]  ;;  %v2561_v62 = vld [vmem:[#allocation16 + $0x8] sm:$0xff]  ;;  %vm1419_vm14 = vcmask 1047559  }
  0x4c   :  { %v2620_v60 = vld [vmem:[#allocation11 + $0x20] sm:$0xf0]  ;;  %v2049_v61 = vor.u32 %v2624_v56, %v2048_v55  ;;  %v2619_v63 = vld [vmem:[#allocation11 + $0x1c] sm:$0xf]  ;;  %v2030_v0 = vld [vmem:[#allocation11 + $0x24] sm:$0xf0] }
  0x4d   :  { %658 = vmatpush.bf16.msra.mxu1 %v2065_v37  ;;  %671 = vmatpush.bf16.msra.mxu2 %v2069_v38  ;;  %v2036_v1 = vld [vmem:[#allocation11 + $0x20] sm:$0xf]  ;;  %v2621_v2 = vld [vmem:[#allocation11 + $0x28] sm:$0xf0]  ;;  %v2029_v4 = vor.u32 %v2620_v60, %v2028_v59  ;;  %v2616_v6 = vld [vmem:[#allocation11 + $0x4] sm:$0xf]  ;;  %v2033_v8 = vor.u32 %v2619_v63, %v2030_v0 }
  0x4e   :  { %684 = vmatpush.bf16.msra.mxu3 %v2073_v41  ;;  %304 = vmatpush.bf16.msra.mxu0 %v2563_v44  ;;  %v2016_v3 = vld [vmem:[#allocation11] sm:$0xf]  ;;  %v2617_v5 = vld [vmem:[#allocation11 + $0x8] sm:$0xf0]  ;;  %v2018_v7 = vld [vmem:[#allocation11 + $0xc] sm:$0xf0]  ;;  %v2037_v13 = vor.u32 %v2621_v2, %v2036_v1 }
  0x4f   :  { %v2560_v9 = vld [vmem:[#allocation16] sm:$0xff]  ;;  %v2024_v10 = vld [vmem:[#allocation11 + $0x8] sm:$0xf]  ;;  %v2613_v11 = vld [vmem:[#allocation10 + $0x16c] sm:$0xf]  ;;  %v2017_v20 = vor.u32 %v2617_v5, %v2016_v3  ;;  %v2021_v25 = vor.u32 %v2616_v6, %v2018_v7  ;;  %vm1422_vm15 = vcmask 64512  }
  0x50   :  { %v2294_v12 = vld [vmem:[#allocation10 + $0x174] sm:$0xf0]  ;;  %v2618_v14 = vld [vmem:[#allocation11 + $0x10] sm:$0xf0]  ;;  %v2196_v15 = vld [vmem:[#allocation10 + $0xa8] sm:$0xf] }
  0x51   :  { %659 = vmatpush.bf16.msra.mxu1 %v2053_v47  ;;  %672 = vmatpush.bf16.msra.mxu2 %v2057_v48  ;;  %v2590_v16 = vld [vmem:[#allocation10 + $0xb0] sm:$0xf0]  ;;  %v2292_v17 = vld [vmem:[#allocation10 + $0x168] sm:$0xf]  ;;  %v2589_v19 = vld [vmem:[#allocation10 + $0xac] sm:$0xf]  ;;  %v2297_v24 = vor.u32 %v2613_v11, %v2294_v12  ;;  %v2025_v29 = vor.u32 %v2618_v14, %v2024_v10 }
  0x52   :  { %685 = vmatpush.bf16.msra.mxu3 %v2061_v51  ;;  %305 = vmatpush.bf16.msra.mxu0 %v2562_v54  ;;  %v2614_v18 = vld [vmem:[#allocation10 + $0x170] sm:$0xf0]  ;;  %v2198_v21 = vld [vmem:[#allocation10 + $0xb4] sm:$0xf0]  ;;  %v223_v22 = vld [vmem:[#allocation8] sm:$0xff]  ;;  %v2197_v26 = vor.u32 %v2590_v16, %v2196_v15  ;;  %s1947_s20 = sshll.u32 %s3476_s17, 4  ;;  %s1948_s20 = int_to_ptr.hbm [resolvable:$true] %s1947_s20 }
  0x53   :  { %v224_v23 = vld [vmem:[#allocation8 + $0x8] sm:$0xff]  ;;  %v2610_v27 = vld [vmem:[#allocation10 + $0x154] sm:$0xf]  ;;  %v2282_v28 = vld [vmem:[#allocation10 + $0x15c] sm:$0xf0]  ;;  %v2293_v30 = vor.u32 %v2614_v18, %v2292_v17  ;;  %v2201_v33 = vor.u32 %v2589_v19, %v2198_v21  ;;  %s3158_s22 = smov [#allocation21]  }
  0x54   :  { %v2184_v31 = vld [vmem:[#allocation10 + $0x90] sm:$0xf]  ;;  %v2587_v32 = vld [vmem:[#allocation10 + $0x98] sm:$0xf0]  ;;  %v248_v34 = vpack.c.bf16 %v224_v23, %v223_v22  ;;  %v2586_v37 = vld [vmem:[#allocation10 + $0x94] sm:$0xf]  ;;  %v2285_v39 = vor.u32 %v2610_v27, %v2282_v28 }
  0x55   :  { %660 = vmatpush.bf16.msra.mxu1 %v2041_v57  ;;  %673 = vmatpush.bf16.msra.mxu2 %v2045_v58  ;;  %v2280_v35 = vld [vmem:[#allocation10 + $0x150] sm:$0xf]  ;;  %v2611_v36 = vld [vmem:[#allocation10 + $0x158] sm:$0xf0]  ;;  %v2186_v38 = vld [vmem:[#allocation10 + $0x9c] sm:$0xf0]  ;;  %v2185_v40 = vor.u32 %v2587_v32, %v2184_v31 }
  0x56   :  { %686 = vmatpush.bf16.msra.mxu3 %v2049_v61  ;;  %306 = vmatpush.bf16.msra.mxu0 %v2561_v62  ;;  %v2607_v41 = vld [vmem:[#allocation10 + $0x13c] sm:$0xf]  ;;  %v2270_v42 = vld [vmem:[#allocation10 + $0x144] sm:$0xf0]  ;;  %v2281_v43 = vor.u32 %v2611_v36, %v2280_v35  ;;  %v2172_v44 = vld [vmem:[#allocation10 + $0x78] sm:$0xf]  ;;  %v2189_v46 = vor.u32 %v2586_v37, %v2186_v38 }
  0x57   :  { %v2584_v45 = vld [vmem:[#allocation10 + $0x80] sm:$0xf0]  ;;  %v2268_v47 = vld [vmem:[#allocation10 + $0x138] sm:$0xf]  ;;  %v2583_v50 = vld [vmem:[#allocation10 + $0x7c] sm:$0xf]  ;;  %v2273_v52 = vor.u32 %v2607_v41, %v2270_v42 }
  0x58   :  { %v2608_v48 = vld [vmem:[#allocation10 + $0x140] sm:$0xf0]  ;;  %v523_v49 = vld [vmem:[#allocation7] sm:$0xff]  ;;  %v2174_v51 = vld [vmem:[#allocation10 + $0x84] sm:$0xf0]  ;;  %v2173_v54 = vor.u32 %v2584_v45, %v2172_v44  ;;  %s1945_s19 = sshll.u32 %s3158_s22, 4  ;;  %s1946_s19 = int_to_ptr.vmem [resolvable:$true] %s1945_s19 }
  0x59   :  { %661 = vmatpush.bf16.msra.mxu1 %v2029_v4  ;;  %674 = vmatpush.bf16.msra.mxu2 %v2033_v8  ;;  %v526_v53 = vpack.c.bf16 %v523_v49, %v523_v49  ;;  %v2604_v55 = vld [vmem:[#allocation10 + $0x124] sm:$0xf]  ;;  %v2258_v56 = vld [vmem:[#allocation10 + $0x12c] sm:$0xf0]  ;;  %v2269_v57 = vor.u32 %v2608_v48, %v2268_v47  ;;  %v2160_v58 = vld [vmem:[#allocation10 + $0x60] sm:$0xf]  ;;  %v2177_v60 = vor.u32 %v2583_v50, %v2174_v51 }
  0x5a   :  { %687 = vmatpush.bf16.msra.mxu3 %v2037_v13  ;;  %307 = vmatpush.bf16.msra.mxu0 %v2560_v9  ;;  %v2581_v59 = vld [vmem:[#allocation10 + $0x68] sm:$0xf0]  ;;  %v2256_v61 = vld [vmem:[#allocation10 + $0x120] sm:$0xf]  ;;  %v2580_v63 = vld [vmem:[#allocation10 + $0x64] sm:$0xf]  ;;  %v2261_v1 = vor.u32 %v2604_v55, %v2258_v56 }
  0x5b   :  { %v2605_v62 = vld [vmem:[#allocation10 + $0x128] sm:$0xf0]  ;;  %v2162_v0 = vld [vmem:[#allocation10 + $0x6c] sm:$0xf0]  ;;  %v2161_v2 = vor.u32 %v2581_v59, %v2160_v58  ;;  %v2148_v4 = vld [vmem:[#allocation10 + $0x48] sm:$0xf] }
  0x5c   :  { %v2257_v3 = vor.u32 %v2605_v62, %v2256_v61  ;;  %v2578_v5 = vld [vmem:[#allocation10 + $0x50] sm:$0xf0]  ;;  %v2244_v6 = vld [vmem:[#allocation10 + $0x108] sm:$0xf]  ;;  %v2165_v7 = vor.u32 %v2580_v63, %v2162_v0  ;;  %v2577_v9 = vld [vmem:[#allocation10 + $0x4c] sm:$0xf] }
  0x5d   :  { %662 = vmatpush.bf16.msra.mxu1 %v2017_v20  ;;  %675 = vmatpush.bf16.msra.mxu2 %v2021_v25  ;;  %v2602_v8 = vld [vmem:[#allocation10 + $0x110] sm:$0xf0]  ;;  %v2150_v10 = vld [vmem:[#allocation10 + $0x54] sm:$0xf0]  ;;  %v2601_v13 = vld [vmem:[#allocation10 + $0x10c] sm:$0xf]  ;;  %v2149_v14 = vor.u32 %v2578_v5, %v2148_v4 }
  0x5e   :  { %989 = vmatpush.bf16.msrb.mxu0 %v2297_v24  ;;  %688 = vmatpush.bf16.msra.mxu3 %v2025_v29  ;;  %v225_v11 = vld [vmem:[#allocation8 + $0x10] sm:$0xff]  ;;  %v226_v12 = vld [vmem:[#allocation8 + $0x18] sm:$0xff]  ;;  %v2245_v16 = vor.u32 %v2602_v8, %v2244_v6  ;;  %v2153_v20 = vor.u32 %v2577_v9, %v2150_v10  ;;  %v2138_v25 = vld [vmem:[#allocation10 + $0x3c] sm:$0xf0]  ;;  %s1958_s0 = sshll.u32 %s3477_s18, 4  ;;  %s3159_s21 = smov [#allocation23]   ;;  %s1959_s0 = int_to_ptr.hbm [resolvable:$true] %s1958_s0 }
  0x5f   :  { %308 = vmatmul.bf16.vlgmr.msra.gmra.mxu0 %v248_v34  ;;  %v2246_v15 = vld [vmem:[#allocation10 + $0x114] sm:$0xf0]  ;;  %v2136_v17 = vld [vmem:[#allocation10 + $0x30] sm:$0xf]  ;;  %v2575_v18 = vld [vmem:[#allocation10 + $0x38] sm:$0xf0]  ;;  %v249_v21 = vpack.c.bf16 %v226_v12, %v225_v11 }
  0x60   :  { %663 = vmatmul.bf16.vlgmr.msra.gmra.mxu1 %v526_v53  ;;  %676 = vmatmul.bf16.vlgmr.msra.gmra.mxu2 %v526_v53  ;;  %v2249_v19 = vor.u32 %v2601_v13, %v2246_v15  ;;  %v2232_v22 = vld [vmem:[#allocation10 + $0xf0] sm:$0xf]  ;;  %v2599_v23 = vld [vmem:[#allocation10 + $0xf8] sm:$0xf0]  ;;  %v2574_v24 = vld [vmem:[#allocation10 + $0x34] sm:$0xf] }
  0x61   :  { %950 = vmatpush.bf16.msrb.mxu1 %v2197_v26  ;;  %963 = vmatpush.bf16.msrb.mxu2 %v2293_v30  ;;  %v2137_v26 = vor.u32 %v2575_v18, %v2136_v17  ;;  %v2598_v27 = vld [vmem:[#allocation10 + $0xf4] sm:$0xf]  ;;  %v2233_v28 = vor.u32 %v2599_v23, %v2232_v22  ;;  %v2124_v29 = vld [vmem:[#allocation10 + $0x18] sm:$0xf]  ;;  %v2572_v30 = vld [vmem:[#allocation10 + $0x20] sm:$0xf0]  ;;  %v2141_v32 = vor.u32 %v2574_v24, %v2138_v25 }
  0x62   :  { %976 = vmatpush.bf16.msrb.mxu3 %v2201_v33  ;;  %990 = vmatpush.bf16.msrb.mxu0 %v2285_v39  ;;  %v2234_v31 = vld [vmem:[#allocation10 + $0xfc] sm:$0xf0]  ;;  %v2220_v33 = vld [vmem:[#allocation10 + $0xd8] sm:$0xf]  ;;  %v2596_v34 = vld [vmem:[#allocation10 + $0xe0] sm:$0xf0] }
  0x63   :  { %689 = vmatmul.bf16.vlgmr.msra.gmra.mxu3 %v526_v53  ;;  %v2571_v35 = vld [vmem:[#allocation10 + $0x1c] sm:$0xf]  ;;  %v2237_v36 = vor.u32 %v2598_v27, %v2234_v31  ;;  %v2126_v37 = vld [vmem:[#allocation10 + $0x24] sm:$0xf0]  ;;  %v2112_v38 = vld [vmem:[#allocation10] sm:$0xf]  ;;  %v2221_v44 = vor.u32 %v2596_v34, %v2220_v33 }
  0x64   :  { %v2595_v39 = vld [vmem:[#allocation10 + $0xdc] sm:$0xf]  ;;  %v2569_v41 = vld [vmem:[#allocation10 + $0x8] sm:$0xf0]  ;;  %v2208_v42 = vld [vmem:[#allocation10 + $0xc0] sm:$0xf]  ;;  %v2129_v49 = vor.u32 %v2571_v35, %v2126_v37 }
  0x65   :  { %951 = vmatpush.bf16.msrb.mxu1 %v2185_v40  ;;  %964 = vmatpush.bf16.msrb.mxu2 %v2281_v43  ;;  %v2125_v40 = vor.u32 %v2572_v30, %v2124_v29  ;;  %v2222_v43 = vld [vmem:[#allocation10 + $0xe4] sm:$0xf0]  ;;  %v2593_v45 = vld [vmem:[#allocation10 + $0xc8] sm:$0xf0]  ;;  %v2114_v47 = vld [vmem:[#allocation10 + $0xc] sm:$0xf0]  ;;  %v2113_v56 = vor.u32 %v2569_v41, %v2112_v38 }
  0x66   :  { %977 = vmatpush.bf16.msrb.mxu3 %v2189_v46  ;;  %991 = vmatpush.bf16.msrb.mxu0 %v2273_v52  ;;  %v2568_v46 = vld [vmem:[#allocation10 + $0x4] sm:$0xf]  ;;  %v2225_v48 = vor.u32 %v2595_v39, %v2222_v43  ;;  %v2204_v50 = vld [vmem:[#allocation10 + $0xb0] sm:$0xf]  ;;  %v2591_v51 = vld [vmem:[#allocation10 + $0xb8] sm:$0xf0]  ;;  %v2209_v61 = vor.u32 %v2593_v45, %v2208_v42 }
  0x67   :  { %v2300_v52 = vld [vmem:[#allocation10 + $0x170] sm:$0xf]  ;;  %v2615_v53 = vld [vmem:[#allocation10 + $0x178] sm:$0xf0]  ;;  %v2662_v58 = vld [vmem:[#allocation13 + $0xb0] sm:$0xf0]  ;;  %v2205_v62 = vor.u32 %v2591_v51, %v2204_v50 }
  0x68   :  { %v2210_v55 = vld [vmem:[#allocation10 + $0xcc] sm:$0xf0]  ;;  %v520_v59 = vld [vmem:[#allocation2] sm:$0xff]  ;;  %v521_v63 = vld [vmem:[#allocation2 + $0x8] sm:$0xff]  ;;  %s1956_s2 = sshll.u32 %s3159_s21, 4  ;;  %s3160_s17 = smov [#allocation20]   ;;  %s1957_s2 = int_to_ptr.vmem [resolvable:$true] %s1956_s2 }
  0x69   :  { %952 = vmatpush.bf16.msrb.mxu1 %v2173_v54  ;;  %965 = vmatpush.bf16.msrb.mxu2 %v2269_v57  ;;  %v2592_v54 = vld [vmem:[#allocation10 + $0xc4] sm:$0xf]  ;;  %v2388_v57 = vld [vmem:[#allocation13 + $0xa8] sm:$0xf]  ;;  %v2661_v0 = vld [vmem:[#allocation13 + $0xac] sm:$0xf]  ;;  %v3313_v11 = vpack.c.bf16 %v520_v59, %v520_v59 }
  0x6a   :  { %978 = vmatpush.bf16.msrb.mxu3 %v2177_v60  ;;  %992 = vmatpush.bf16.msrb.mxu0 %v2261_v1  ;;  %v2213_v60 = vor.u32 %v2592_v54, %v2210_v55  ;;  %v2390_v1 = vld [vmem:[#allocation13 + $0xb4] sm:$0xf0]  ;;  %v2588_v5 = vld [vmem:[#allocation10 + $0xa0] sm:$0xf0]  ;;  %v228_v10 = vld [vmem:[#allocation8 + $0x28] sm:$0xff]  ;;  %s1934_s6 = sshll.u32 %s3160_s17, 4  ;;  %s1935_s6 = int_to_ptr.vmem [resolvable:$true] %s1934_s6 }
  0x6b   :  { %v2192_v4 = vld [vmem:[#allocation10 + $0x98] sm:$0xf]  ;;  %v2612_v8 = vld [vmem:[#allocation10 + $0x160] sm:$0xf0]  ;;  %v2376_v12 = vld [vmem:[#allocation13 + $0x90] sm:$0xf]  ;;  %v2393_v15 = vor.u32 %v2661_v0, %v2390_v1 }
  0x6c   :  { %v2288_v6 = vld [vmem:[#allocation10 + $0x158] sm:$0xf]  ;;  %v227_v9 = vld [vmem:[#allocation8 + $0x20] sm:$0xff]  ;;  %v2659_v13 = vld [vmem:[#allocation13 + $0x98] sm:$0xf0]  ;;  %s1936_s3 = sshll.u32 %s3475_s16, 4  ;;  %s1937_s3 = int_to_ptr.hbm [resolvable:$true] %s1936_s3 }
  0x6d   :  { %953 = vmatpush.bf16.msrb.mxu1 %v2161_v2  ;;  %966 = vmatpush.bf16.msrb.mxu2 %v2257_v3  ;;  %v2117_v2 = vor.u32 %v2568_v46, %v2114_v47  ;;  %v2301_v3 = vor.u32 %v2615_v53, %v2300_v52  ;;  %v2658_v17 = vld [vmem:[#allocation13 + $0x94] sm:$0xf]  ;;  %v2378_v18 = vld [vmem:[#allocation13 + $0x9c] sm:$0xf0]  ;;  %v2585_v22 = vld [vmem:[#allocation10 + $0x88] sm:$0xf0]  ;;  %v2377_v24 = vor.u32 %v2659_v13, %v2376_v12 }
  0x6e   :  { %979 = vmatpush.bf16.msrb.mxu3 %v2165_v7  ;;  %993 = vmatpush.bf16.msrb.mxu0 %v2249_v19  ;;  %v2389_v7 = vor.u32 %v2662_v58, %v2388_v57  ;;  %v2289_v19 = vor.u32 %v2612_v8, %v2288_v6  ;;  %v2276_v23 = vld [vmem:[#allocation10 + $0x140] sm:$0xf]  ;;  %v2609_v25 = vld [vmem:[#allocation10 + $0x148] sm:$0xf0]  ;;  %v2656_v27 = vld [vmem:[#allocation13 + $0x80] sm:$0xf0] }
  0x6f   :  { %313 = vmatmul.bf16.gmra.mxu0 %v249_v21  ;;  %v2180_v21 = vld [vmem:[#allocation10 + $0x80] sm:$0xf]  ;;  %v2655_v30 = vld [vmem:[#allocation13 + $0x7c] sm:$0xf]  ;;  %v2366_v31 = vld [vmem:[#allocation13 + $0x84] sm:$0xf0] }
  0x70   :  { %v2181_v29 = vor.u32 %v2585_v22, %v2180_v21  ;;  %v2168_v33 = vld [vmem:[#allocation10 + $0x68] sm:$0xf]  ;;  %v2582_v34 = vld [vmem:[#allocation10 + $0x70] sm:$0xf0]  ;;  %v2352_v38 = vld [vmem:[#allocation13 + $0x60] sm:$0xf] }
  0x71   :  { %954 = vmatpush.bf16.msrb.mxu1 %v2149_v14  ;;  %967 = vmatpush.bf16.msrb.mxu2 %v2245_v16  ;;  %v3315_v14 = vpack.c.bf16 %v521_v63, %v521_v63  ;;  %v2193_v16 = vor.u32 %v2588_v5, %v2192_v4  ;;  %v2606_v37 = vld [vmem:[#allocation10 + $0x130] sm:$0xf0]  ;;  %v2653_v39 = vld [vmem:[#allocation13 + $0x68] sm:$0xf0]  ;;  %v2169_v41 = vor.u32 %v2582_v34, %v2168_v33  ;;  %v2652_v42 = vld [vmem:[#allocation13 + $0x64] sm:$0xf] }
  0x72   :  { %980 = vmatpush.bf16.msrb.mxu3 %v2153_v20  ;;  %994 = vmatpush.bf16.msrb.mxu0 %v2237_v36  ;;  %v250_v20 = vpack.c.bf16 %v228_v10, %v227_v9  ;;  %v2264_v36 = vld [vmem:[#allocation10 + $0x128] sm:$0xf]  ;;  %v2354_v43 = vld [vmem:[#allocation13 + $0x6c] sm:$0xf0]  ;;  %v2579_v46 = vld [vmem:[#allocation10 + $0x58] sm:$0xf0]  ;;  %v2353_v47 = vor.u32 %v2653_v39, %v2352_v38 }
  0x73   :  { %v2156_v45 = vld [vmem:[#allocation10 + $0x50] sm:$0xf]  ;;  %v2340_v50 = vld [vmem:[#allocation13 + $0x48] sm:$0xf]  ;;  %v2650_v51 = vld [vmem:[#allocation13 + $0x50] sm:$0xf0]  ;;  %v2357_v52 = vor.u32 %v2652_v42, %v2354_v43 }
  0x74   :  { %v2157_v53 = vor.u32 %v2579_v46, %v2156_v45  ;;  %v2649_v54 = vld [vmem:[#allocation13 + $0x4c] sm:$0xf]  ;;  %v2342_v55 = vld [vmem:[#allocation13 + $0x54] sm:$0xf0]  ;;  %v2576_v58 = vld [vmem:[#allocation10 + $0x40] sm:$0xf0] }
  0x75   :  { %955 = vmatpush.bf16.msrb.mxu1 %v2137_v26  ;;  %968 = vmatpush.bf16.msrb.mxu2 %v2233_v28  ;;  %v2364_v26 = vld [vmem:[#allocation13 + $0x78] sm:$0xf]  ;;  %v2381_v28 = vor.u32 %v2658_v17, %v2378_v18  ;;  %v2328_v0 = vld [vmem:[#allocation13 + $0x30] sm:$0xf]  ;;  %v2647_v1 = vld [vmem:[#allocation13 + $0x38] sm:$0xf0] }
  0x76   :  { %981 = vmatpush.bf16.msrb.mxu3 %v2141_v32  ;;  %995 = vmatpush.bf16.msrb.mxu0 %v2225_v48  ;;  %v2277_v32 = vor.u32 %v2609_v25, %v2276_v23  ;;  %v2365_v35 = vor.u32 %v2656_v27, %v2364_v26  ;;  %v2252_v48 = vld [vmem:[#allocation10 + $0x110] sm:$0xf]  ;;  %v2144_v57 = vld [vmem:[#allocation10 + $0x38] sm:$0xf]  ;;  %v2646_v4 = vld [vmem:[#allocation13 + $0x34] sm:$0xf]  ;;  %v2329_v10 = vor.u32 %v2647_v1, %v2328_v0 }
  0x77   :  { %v2240_v59 = vld [vmem:[#allocation10 + $0xf8] sm:$0xf]  ;;  %v2330_v5 = vld [vmem:[#allocation13 + $0x3c] sm:$0xf0]  ;;  %v2573_v9 = vld [vmem:[#allocation10 + $0x28] sm:$0xf0] }
  0x78   :  { %v230_v63 = vld [vmem:[#allocation8 + $0x38] sm:$0xff]  ;;  %v2132_v8 = vld [vmem:[#allocation10 + $0x20] sm:$0xf]  ;;  %v2597_v13 = vld [vmem:[#allocation10 + $0xe8] sm:$0xf0]  ;;  %v2333_v17 = vor.u32 %v2646_v4, %v2330_v5 }
  0x79   :  { %956 = vmatpush.bf16.msrb.mxu1 %v2125_v40  ;;  %969 = vmatpush.bf16.msrb.mxu2 %v2221_v44  ;;  %v2369_v40 = vor.u32 %v2655_v30, %v2366_v31  ;;  %v2265_v44 = vor.u32 %v2606_v37, %v2264_v36  ;;  %v2228_v12 = vld [vmem:[#allocation10 + $0xe0] sm:$0xf]  ;;  %v2133_v18 = vor.u32 %v2573_v9, %v2132_v8  ;;  %v2120_v22 = vld [vmem:[#allocation10 + $0x8] sm:$0xf]  ;;  %v2570_v23 = vld [vmem:[#allocation10 + $0x10] sm:$0xf0] }
  0x7a   :  { %982 = vmatpush.bf16.msrb.mxu3 %v2129_v49  ;;  %996 = vmatpush.bf16.msrb.mxu0 %v2213_v60  ;;  %v2603_v49 = vld [vmem:[#allocation10 + $0x118] sm:$0xf0]  ;;  %v2341_v60 = vor.u32 %v2650_v51, %v2340_v50  ;;  %v2229_v21 = vor.u32 %v2597_v13, %v2228_v12  ;;  %v2594_v26 = vld [vmem:[#allocation10 + $0xd0] sm:$0xf0]  ;;  %v2396_v27 = vld [vmem:[#allocation13 + $0xb0] sm:$0xf] }
  0x7b   :  { %v2641_v30 = vld [vmem:[#allocation13 + $0x8] sm:$0xf0]  ;;  %v2640_v33 = vld [vmem:[#allocation13 + $0x4] sm:$0xf]  ;;  %v2306_v34 = vld [vmem:[#allocation13 + $0xc] sm:$0xf0] }
  0x7c   :  { %v3320_v38 = vld [vmem:[#allocation5] sm:$0xff]  ;;  %v2384_v39 = vld [vmem:[#allocation13 + $0x98] sm:$0xf]  ;;  %v2657_v45 = vld [vmem:[#allocation13 + $0x88] sm:$0xf0] }
  0x7d   :  { %957 = vmatpush.bf16.msrb.mxu1 %v2113_v56  ;;  %970 = vmatpush.bf16.msrb.mxu2 %v2209_v61  ;;  %v2253_v56 = vor.u32 %v2603_v49, %v2252_v48  ;;  %v2600_v61 = vld [vmem:[#allocation10 + $0x100] sm:$0xf0]  ;;  %v1038_v42 = vpack.c.bf16 %v3320_v38, %v3320_v38  ;;  %v2654_v48 = vld [vmem:[#allocation13 + $0x70] sm:$0xf0]  ;;  %v2348_v50 = vld [vmem:[#allocation13 + $0x50] sm:$0xf] }
  0x7e   :  { %983 = vmatpush.bf16.msrb.mxu3 %v2117_v2  ;;  %1187 = vmatpush.bf16.msra.mxu0 %v2393_v15  ;;  %v2345_v2 = vor.u32 %v2649_v54, %v2342_v55  ;;  %v2241_v6 = vor.u32 %v2600_v61, %v2240_v59  ;;  %v2316_v15 = vld [vmem:[#allocation13 + $0x18] sm:$0xf]  ;;  %v2651_v51 = vld [vmem:[#allocation13 + $0x58] sm:$0xf0]  ;;  %v2648_v54 = vld [vmem:[#allocation13 + $0x40] sm:$0xf0] }
  0x7f   :  { %318 = vmatmul.bf16.gmra.mxu0 %v250_v20  ;;  %v2318_v20 = vld [vmem:[#allocation13 + $0x24] sm:$0xf0]  ;;  %v2324_v55 = vld [vmem:[#allocation13 + $0x20] sm:$0xf]  ;;  %v2642_v59 = vld [vmem:[#allocation13 + $0x10] sm:$0xf0] }
  0x80   :  { %958 = vmatmul.bf16.vlgmr.msrb.gmra.mxu1 %v3313_v11  ;;  %971 = vmatmul.bf16.vlgmr.msrb.gmra.mxu2 %v3315_v14 }
  0x81   :  { %1002 = vmatpush.bf16.msra.mxu1 %v2205_v62  ;;  %1015 = vmatpush.bf16.msra.mxu2 %v2301_v3  ;;  %v229_v62 = vld [vmem:[#allocation8 + $0x30] sm:$0xff]  ;;  %v2145_v3 = vor.u32 %v2576_v58, %v2144_v57  ;;  %v2312_v58 = vld [vmem:[#allocation13 + $0x8] sm:$0xf] }
  0x82   :  { %1174 = vmatpush.bf16.msra.mxu3 %v2389_v7  ;;  %1188 = vmatpush.bf16.msra.mxu0 %v2381_v28  ;;  %v251_v7 = vpack.c.bf16 %v230_v63, %v229_v62  ;;  %v2663_v28 = vld [vmem:[#allocation13 + $0xb8] sm:$0xf0] }
  0x83   :  { %984 = vmatmul.bf16.vlgmr.msrb.gmra.mxu3 %v3313_v11  ;;  %v2397_v36 = vor.u32 %v2663_v28, %v2396_v27  ;;  %v3354_v27 = vld [vmem:[%s3466_s7] sm:$0x7] }
  0x84   :  { %v3359_v28 = vld [vmem:[%s3467_s8] sm:$0x7] }
  0x85   :  { %1003 = vmatpush.bf16.msra.mxu1 %v2193_v16  ;;  %1016 = vmatpush.bf16.msra.mxu2 %v2289_v19  ;;  %v2644_v16 = vld [vmem:[#allocation13 + $0x20] sm:$0xf0]  ;;  %v2643_v19 = vld [vmem:[#allocation13 + $0x1c] sm:$0xf] }
  0x86   :  { %1175 = vmatpush.bf16.msra.mxu3 %v2377_v24  ;;  %1189 = vmatpush.bf16.msra.mxu0 %v2369_v40  ;;  %v2216_v24 = vld [vmem:[#allocation10 + $0xc8] sm:$0xf]  ;;  %v2317_v25 = vor.u32 %v2644_v16, %v2316_v15  ;;  %v2321_v31 = vor.u32 %v2643_v19, %v2318_v20  ;;  %v2660_v40 = vld [vmem:[#allocation13 + $0xa0] sm:$0xf0]  ;;  %v2671_v15 = vld [vmem:[#allocation14 + $0x38] sm:$0xff] }
  0x87   :  { %v2385_v43 = vor.u32 %v2660_v40, %v2384_v39  ;;  %v2669_v19 = vld [vmem:[#allocation14 + $0x28] sm:$0xff]  ;;  %v2538_v39 = vld [vmem:[#allocation17 + $0x50] sm:$0xf]  ;;  %v2683_v40 = vld [vmem:[#allocation17 + $0x54] sm:$0xf0] }
  0x89   :  { %1004 = vmatpush.bf16.msra.mxu1 %v2181_v29  ;;  %1017 = vmatpush.bf16.msra.mxu2 %v2277_v32  ;;  %v2304_v29 = vld [vmem:[#allocation13] sm:$0xf]  ;;  %v2121_v32 = vor.u32 %v2570_v23, %v2120_v22  ;;  %v2554_v22 = vld [vmem:[#allocation17 + $0x70] sm:$0xf]  ;;  %v2687_v23 = vld [vmem:[#allocation17 + $0x74] sm:$0xf0] }
  0x8a   :  { %1176 = vmatpush.bf16.msra.mxu3 %v2365_v35  ;;  %1190 = vmatpush.bf16.msra.mxu0 %v2357_v52  ;;  %v2217_v35 = vor.u32 %v2594_v26, %v2216_v24  ;;  %v2305_v37 = vor.u32 %v2641_v30, %v2304_v29  ;;  %v2349_v52 = vor.u32 %v2651_v51, %v2348_v50  ;;  %v2667_v29 = vld [vmem:[#allocation14 + $0x18] sm:$0xff]  ;;  %v2546_v30 = vld [vmem:[#allocation17 + $0x60] sm:$0xf] }
  0x8b   :  { %v2555_v24 = vor.u32 %v2687_v23, %v2554_v22  ;;  %v2682_v22 = vld [vmem:[#allocation17 + $0x54] sm:$0xf]  ;;  %v2540_v23 = vld [vmem:[#allocation17 + $0x58] sm:$0xf0] }
  0x8d   :  { %1005 = vmatpush.bf16.msra.mxu1 %v2169_v41  ;;  %1018 = vmatpush.bf16.msra.mxu2 %v2265_v44  ;;  %v2309_v41 = vor.u32 %v2640_v33, %v2306_v34  ;;  %v2372_v44 = vld [vmem:[#allocation13 + $0x80] sm:$0xf]  ;;  %v1029_v34 = vperm.slane %v3354_v27, 0 }
  0x8e   :  { %1177 = vmatpush.bf16.msra.mxu3 %v2353_v47  ;;  %1191 = vmatpush.bf16.msra.mxu0 %v2345_v2  ;;  %v2373_v46 = vor.u32 %v2657_v45, %v2372_v44  ;;  %v2360_v47 = vld [vmem:[#allocation13 + $0x68] sm:$0xf] }
  0x8f   :  { %323 = vmatmul.bf16.gmra.mxu0 %v251_v7  ;;  %v2361_v49 = vor.u32 %v2654_v48, %v2360_v47  ;;  %v2665_v47 = vld [vmem:[#allocation14 + $0x8] sm:$0xff]  ;;  %v2530_v48 = vld [vmem:[#allocation17 + $0x40] sm:$0xf] }
  0x91   :  { %1006 = vmatpush.bf16.msra.mxu1 %v2157_v53  ;;  %1019 = vmatpush.bf16.msra.mxu2 %v2253_v56  ;;  %v2336_v53 = vld [vmem:[#allocation13 + $0x38] sm:$0xf]  ;;  %v2645_v56 = vld [vmem:[#allocation13 + $0x28] sm:$0xf0] }
  0x92   :  { %1178 = vmatpush.bf16.msra.mxu3 %v2341_v60  ;;  %1192 = vmatpush.bf16.msra.mxu0 %v2333_v17  ;;  %v2325_v57 = vor.u32 %v2645_v56, %v2324_v55  ;;  %v2313_v60 = vor.u32 %v2642_v59, %v2312_v58  ;;  %v2679_v55 = vld [vmem:[#allocation17 + $0x34] sm:$0xf0]  ;;  %v2686_v58 = vld [vmem:[#allocation17 + $0x74] sm:$0xf]  ;;  %v2556_v59 = vld [vmem:[#allocation17 + $0x78] sm:$0xf0] }
  0x95   :  { %1007 = vmatpush.bf16.msra.mxu1 %v2145_v3  ;;  %1020 = vmatpush.bf16.msra.mxu2 %v2241_v6 }
  0x96   :  { %1179 = vmatpush.bf16.msra.mxu3 %v2329_v10  ;;  %1193 = vmatpush.bf16.msra.mxu0 %v2321_v31  ;;  %v2685_v31 = vld [vmem:[#allocation17 + $0x64] sm:$0xf0] }
  0x99   :  { %1008 = vmatpush.bf16.msra.mxu1 %v2133_v18  ;;  %1021 = vmatpush.bf16.msra.mxu2 %v2229_v21  ;;  %v2670_v18 = vld [vmem:[#allocation14 + $0x30] sm:$0xff]  ;;  %v2668_v21 = vld [vmem:[#allocation14 + $0x20] sm:$0xff] }
  0x9a   :  { %1180 = vmatpush.bf16.msra.mxu3 %v2317_v25  ;;  %1194 = vmatpush.bf16.msra.mxu0 %v2309_v41 }
  0x9d   :  { %1009 = vmatpush.bf16.msra.mxu1 %v2121_v32  ;;  %1022 = vmatpush.bf16.msra.mxu2 %v2217_v35  ;;  %v2547_v32 = vor.u32 %v2685_v31, %v2546_v30  ;;  %v1040_v35 = vperm.slane %v3359_v28, 0  ;;  %v2498_v30 = vld [vmem:[#allocation17] sm:$0xf]  ;;  %v2673_v31 = vld [vmem:[#allocation17 + $0x4] sm:$0xf0] }
  0x9e   :  { %1181 = vmatpush.bf16.msra.mxu3 %v2305_v37  ;;  %v2666_v37 = vld [vmem:[#allocation14 + $0x10] sm:$0xff] }
  0x9f   :  { %997 = vmatmul.bf16.vlgmr.msrb.gmra.mxu0 %v3315_v14 }
  0xa0   :  { %1010 = vmatmul.bf16.vlgmr.msra.gmra.mxu1 %v3313_v11  ;;  %1023 = vmatmul.bf16.vlgmr.msra.gmra.mxu2 %v3315_v14  ;;  %v2337_v11 = vor.u32 %v2648_v54, %v2336_v53  ;;  %v2664_v54 = vld [vmem:[#allocation14] sm:$0xff] }
  0xa1   :  { %1200 = vmatpush.bf16.msrb.mxu1 %v2397_v36  ;;  %1182 = vmatmul.bf16.vlgmr.msra.gmra.mxu3 %v1038_v42 }
  0xa2   :  { %1309 = vmatpush.bf16.msrb.mxu2 %v2671_v15  ;;  %v2675_v15 = vld [vmem:[#allocation17 + $0x14] sm:$0xf0] }
  0xa5   :  { %1201 = vmatpush.bf16.msrb.mxu1 %v2385_v43 }
  0xa6   :  { %1310 = vmatpush.bf16.msrb.mxu2 %v2670_v18  ;;  %v1030_v18 = vperm.slane %v3354_v27, 1 }
  0xa9   :  { %1202 = vmatpush.bf16.msrb.mxu1 %v2373_v46 }
  0xaa   :  { %1311 = vmatpush.bf16.msrb.mxu2 %v2669_v19  ;;  %v1041_v19 = vperm.slane %v3359_v28, 1 }
  0xad   :  { %1203 = vmatpush.bf16.msrb.mxu1 %v2361_v49  ;;  %v2681_v49 = vld [vmem:[#allocation17 + $0x44] sm:$0xf0] }
  0xae   :  { %1312 = vmatpush.bf16.msrb.mxu2 %v2668_v21  ;;  %v2531_v51 = vor.u32 %v2681_v49, %v2530_v48  ;;  %v2676_v49 = vld [vmem:[#allocation17 + $0x24] sm:$0xf] }
  0xaf   :  { %1195 = vmatmul.bf16.vlgmr.msra.gmra.mxu0 %v1038_v42 }
  0xb1   :  { %1204 = vmatpush.bf16.msrb.mxu1 %v2349_v52 }
  0xb2   :  { %1313 = vmatpush.bf16.msrb.mxu2 %v2667_v29  ;;  %v2543_v29 = vor.u32 %v2682_v22, %v2540_v23 }
  0xb5   :  { %1205 = vmatpush.bf16.msrb.mxu1 %v2337_v11  ;;  %v2522_v11 = vld [vmem:[#allocation17 + $0x30] sm:$0xf] }
  0xb6   :  { %1314 = vmatpush.bf16.msrb.mxu2 %v2666_v37  ;;  %v2499_v37 = vor.u32 %v2673_v31, %v2498_v30 }
  0xb9   :  { %1206 = vmatpush.bf16.msrb.mxu1 %v2325_v57  ;;  %v2523_v57 = vor.u32 %v2679_v55, %v2522_v11 }
  0xba   :  { %1315 = vmatpush.bf16.msrb.mxu2 %v2665_v47 }
  0xbd   :  { %1207 = vmatpush.bf16.msrb.mxu1 %v2313_v60 }
  0xbe   :  { %1316 = vmatpush.bf16.msrb.mxu2 %v2664_v54 }
  0xc0   :  { %1208 = vmatmul.bf16.vlgmr.msrb.gmra.mxu1 %v1038_v42  ;;  %v2539_v42 = vor.u32 %v2683_v40, %v2538_v39 }
  0xc1   :  { %1859 = vmatpush.bf16.msra.mxu1 %v2555_v24 }
  0xc5   :  { %1860 = vmatpush.bf16.msra.mxu1 %v2547_v32 }
  0xc9   :  { %1861 = vmatpush.bf16.msra.mxu1 %v2539_v42 }
  0xcd   :  { %1862 = vmatpush.bf16.msra.mxu1 %v2531_v51  ;;  %v1042_v51 = vperm.slane %v3359_v28, 2 }
  0xd1   :  { %1863 = vmatpush.bf16.msra.mxu1 %v2523_v57 }
  0xdc   :  { %v3327_v14 = vpop.f32.mrf.mxu0 }
  0xdd   :  { %v664_v61 = vpop.f32.mrf.mxu1 }
  0xe3   :  { %v3331_v63 = vpop.f32.mrf.mxu2 }
  0xe4   :  { %v3329_v62 = vpop.f32.mrf.mxu0 }
  0xe5   :  { %v666_v1 = vpop.f32.mrf.mxu1 }
  0xe6   :  { %v3333_v0 = vpop.f32.mrf.mxu3 }
  0xeb   :  { %v679_v3 = vpop.f32.mrf.mxu2 }
  0xec   :  { %v3335_v2 = vpop.f32.mrf.mxu0  ;;  %v2514_v3 = vld [vmem:[#allocation17 + $0x20] sm:$0xf] }
  0xee   :  { %v692_v4 = vpop.f32.mrf.mxu3 }
  0xef   :  { %v2677_v4 = vld [vmem:[#allocation17 + $0x24] sm:$0xf0] }
  0xf4   :  { %v3337_v5 = vpop.f32.mrf.mxu0 }
  0xfc   :  { %v3339_v7 = vpop.f32.mrf.mxu0 }
  0xfd   :  { %v959_v6 = vpop.f32.mrf.mxu1 }
  0xfe   :  { %v960_v26 = vadd.f32 %v959_v6, %v664_v61  ;;  %v2559_v61 = vor.u32 %v2686_v58, %v2556_v59  ;;  %v2684_v6 = vld [vmem:[#allocation17 + $0x64] sm:$0xf]  ;;  %v2674_v58 = vld [vmem:[#allocation17 + $0x14] sm:$0xf]  ;;  %v2508_v59 = vld [vmem:[#allocation17 + $0x18] sm:$0xf0] }
 0x100   :  { %1872 = vmatpush.bf16.msra.mxu2 %v2559_v61 }
 0x103   :  { %v972_v8 = vpop.f32.mrf.mxu2 }
 0x104   :  { %v3343_v12 = vpop.f32.mrf.mxu0  ;;  %v973_v33 = vadd.f32 %v972_v8, %v960_v26  ;;  %v2515_v8 = vor.u32 %v2677_v4, %v2514_v3 }
 0x105   :  { %v961_v10 = vpop.f32.mrf.mxu1 }
 0x106   :  { %v3341_v9 = vpop.f32.mrf.mxu3  ;;  %v1035_v45 = vadd.f32 %v1029_v34, %v973_v33  ;;  %v2548_v10 = vld [vmem:[#allocation17 + $0x68] sm:$0xf0]  ;;  %1864 = vmatpush.bf16.msra.mxu1 %v2515_v8  ;;  %v2680_v34 = vld [vmem:[#allocation17 + $0x44] sm:$0xf]  ;;  %v2511_v8 = vor.u32 %v2674_v58, %v2508_v59 }
 0x107   :  { %v986_v1 = vadd.f32 %v3341_v9, %v3331_v63  ;;  %v2551_v21 = vor.u32 %v2684_v6, %v2548_v10  ;;  %v2500_v10 = vld [vmem:[#allocation17 + $0x8] sm:$0xf0] }
 0x109   :  { %1873 = vmatpush.bf16.msra.mxu2 %v2551_v21 }
 0x10b   :  { %v974_v13 = vpop.f32.mrf.mxu2 }
 0x10c   :  { %v3345_v17 = vpop.f32.mrf.mxu0  ;;  %v2506_v13 = vld [vmem:[#allocation17 + $0x10] sm:$0xf] }
 0x10d   :  { %v2507_v63 = vor.u32 %v2675_v15, %v2506_v13  ;;  %1874 = vmatpush.bf16.msra.mxu2 %v2543_v29 }
 0x10e   :  { %v987_v16 = vpop.f32.mrf.mxu3 }
 0x10f   :  { %1865 = vmatpush.bf16.msra.mxu1 %v2507_v63 }
 0x113   :  { %1866 = vmatpush.bf16.msra.mxu1 %v2499_v37  ;;  %v2728_v37 = vld [vmem:[%s3470_s11] ss:$0 sm:$0xff] }
 0x114   :  { %v3347_v20 = vpop.f32.mrf.mxu0 }
 0x11c   :  { %v998_v36 = vpop.f32.mrf.mxu0 }
 0x11d   :  { %v3349_v25 = vpop.f32.mrf.mxu1  ;;  %v999_v16 = vadd.f32 %v998_v36, %v986_v1 }
 0x11e   :  { %v1012_v55 = vadd.f32 %v3349_v25, %v3333_v0  ;;  %v2672_v25 = vld [vmem:[#allocation17 + $0x4] sm:$0xf] }
 0x11f   :  { %v1036_v32 = vadd.f32 %v1030_v18, %v999_v16 }
 0x123   :  { %v3363_v41 = vpop.f32.mrf.mxu2 }
 0x124   :  { %v1183_v43 = vpop.f32.mrf.mxu3  ;;  %v1000_v53 = vpop.f32.mrf.mxu0  ;;  %v1025_v1 = vadd.f32 %v3363_v41, %v1012_v55 }
 0x125   :  { %v1013_v44 = vpop.f32.mrf.mxu1  ;;  %v1184_v46 = vadd.f32 %v1183_v43, %v1040_v35  ;;  %v2532_v35 = vld [vmem:[#allocation17 + $0x48] sm:$0xf0] }
 0x126   :  { %v2535_v39 = vor.u32 %v2680_v34, %v2532_v35 }
 0x127   :  { %v1213_v50 = vadd.f32 %v1184_v46, %v1035_v45  ;;  %v2678_v45 = vld [vmem:[#allocation17 + $0x34] sm:$0xf]  ;;  %v2524_v46 = vld [vmem:[#allocation17 + $0x38] sm:$0xf0] }
 0x128   :  { %1875 = vmatpush.bf16.msra.mxu2 %v2535_v39  ;;  %v2527_v48 = vor.u32 %v2678_v45, %v2524_v46  ;;  %v332_v39 = vadd.f32 %v2728_v37, %v3327_v14  ;;  %v336_v46 = vadd.f32 %v2728_v37, %v3339_v7  ;;  %v335_v7 = vadd.f32 %v2728_v37, %v3337_v5 }
 0x129   :  { %v2398_v52 = vmul.f32 -1.442695, %v1213_v50  ;;  %v2516_v50 = vld [vmem:[#allocation17 + $0x28] sm:$0xf0] }
 0x12a   :  { %v2519_v54 = vor.u32 %v2676_v49, %v2516_v50 }
 0x12b   :  { %2730 = vpow2.f32 %v2398_v52  ;;  %v1026_v56 = vpop.f32.mrf.mxu2 }
 0x12c   :  { %v1185_v60 = vpop.f32.mrf.mxu3  ;;  %v1196_v26 = vpop.f32.mrf.mxu0  ;;  %1876 = vmatpush.bf16.msra.mxu2 %v2527_v48 }
 0x12d   :  { %v1197_v33 = vadd.f32 %v1196_v26, %v1041_v19  ;;  %v1031_v60 = vperm.slane %v3354_v27, 2  ;;  %v2503_v27 = vor.u32 %v2672_v25, %v2500_v10 }
 0x12f   :  { %v1233_v36 = vadd.f32 %v1197_v33, %v1036_v32  ;;  %v1037_v15 = vadd.f32 %v1031_v60, %v1025_v1  ;;  %v2729_v60 = vld [vmem:[%s3471_s12] ss:$0 sm:$0xff] }
 0x130   :  { %1877 = vmatpush.bf16.msra.mxu2 %v2519_v54  ;;  %v333_v54 = vadd.f32 %v2728_v37, %v3329_v62 }
 0x131   :  { %v2731_v24 = vpop.eup %2730  ;;  %v2399_v40 = vmul.f32 -1.442695, %v1233_v36 }
 0x132   :  { %v1217_v9 = vadd.f32 1.0, %v2731_v24 }
 0x134   :  { %2732 = vrcp.f32 %v1217_v9  ;;  %v1198_v44 = vpop.f32.mrf.mxu0  ;;  %v1229_v53 = vand.u32 2147483648, %v1217_v9  ;;  %v1227_v57 = vand.u32 2147483647, %v1217_v9  ;;  %vm1223_vm1 = vweird.f32 %v1217_v9  ;;  %1878 = vmatpush.bf16.msra.mxu2 %v2511_v8 }
 0x135   :  { %2734 = vpow2.f32 %v2399_v40 }
 0x136   :  { %v1230_v6 = vor.u32 1.1754944e-38, %v1229_v53  ;;  %vm1228_vm3 = vcmp.eq.f32.partialorder %v1227_v57, 8.507059e+37  ;;  %v337_v57 = vadd.f32 %v2728_v37, %v3343_v12  ;;  %v338_v12 = vadd.f32 %v2728_v37, %v3345_v17 }
 0x138   :  { %1879 = vmatpush.bf16.msra.mxu2 %v2503_v27 }
 0x13a   :  { %v2733_v43 = vpop.eup %2732 }
 0x13b   :  { %v1219_v47 = vmul.f32 %v2733_v43, %v1217_v9  ;;  %v2735_v11 = vpop.eup %2734  ;;  %vm1224_vm0 = vweird.f32 %v2733_v43 }
 0x13c   :  { %v1237_v61 = vadd.f32 1.0, %v2735_v11  ;;  %vm1225_vm2 = vmor %vm1223_vm1, %vm1224_vm0 }
 0x13d   :  { %v1209_v42 = vpop.f32.mrf.mxu1  ;;  %v1220_v52 = vsub.f32 1.0, %v1219_v47 }
 0x13e   :  { %v1210_v3 = vadd.f32 %v1209_v42, %v1042_v51  ;;  %2736 = vrcp.f32 %v1237_v61  ;;  %v1249_v22 = vand.u32 2147483648, %v1237_v61  ;;  %v1247_v24 = vand.u32 2147483647, %v1237_v61 }
 0x13f   :  { %v1221_v56 = vmul.f32 %v2733_v43, %v1220_v52  ;;  %vm1243_vm5 = vweird.f32 %v1237_v61 }
 0x140   :  { %v1250_v9 = vor.u32 1.1754944e-38, %v1249_v22  ;;  %vm1248_vm7 = vcmp.eq.f32.partialorder %v1247_v24, 8.507059e+37 }
 0x141   :  { %v1222_v28 = vadd.f32 %v2733_v43, %v1221_v56 }
 0x143   :  { %v1226_v0 = vsel %vm1225_vm2, %v2733_v43, %v1222_v28 }
 0x144   :  { %v1231_v13 = vsel %vm1228_vm3, %v1230_v6, %v1226_v0  ;;  %v2737_v41 = vpop.eup %2736 }
 0x145   :  { %v1211_v4 = vpop.f32.mrf.mxu1  ;;  %v1253_v16 = vmul.f32 %v1231_v13, %v1210_v3  ;;  %v1239_v19 = vmul.f32 %v2737_v41, %v1237_v61  ;;  %vm1244_vm4 = vweird.f32 %v2737_v41  ;;  %v339_v13 = vadd.f32 %v2728_v37, %v3347_v20 }
 0x146   :  { %vm1245_vm6 = vmor %vm1243_vm5, %vm1244_vm4 }
 0x147   :  { %v1254_v18 = vadd.f32 %v1253_v16, %v1037_v15  ;;  %v1240_v21 = vsub.f32 1.0, %v1239_v19 }
 0x149   :  { %v1241_v23 = vmul.f32 %v2737_v41, %v1240_v21  ;;  %2738 = vtanh.f32 %v1254_v18 }
 0x14b   :  { %v1242_v63 = vadd.f32 %v2737_v41, %v1241_v23 }
 0x14d   :  { %v1246_v26 = vsel %vm1245_vm6, %v2737_v41, %v1242_v63 }
 0x14e   :  { %v1251_v29 = vsel %vm1248_vm7, %v1250_v9, %v1246_v26  ;;  %v1397_v26 = vlaneseq }
 0x14f   :  { %v1256_v30 = vsub.f32 1.0, %v1251_v29  ;;  %v2739_v31 = vpop.eup %2738  ;;  %v1258_v33 = vmul.f32 %v1251_v29, %v3320_v38  ;;  %v334_v38 = vadd.f32 %v2728_v37, %v3335_v2 }
 0x151   :  { %v1257_v32 = vmul.f32 %v2739_v31, %v1256_v30  ;;  %v3393_v31 = vand.u32 127, %v1397_v26 }
 0x153   :  { %v1259_v34 = vadd.f32 %v1258_v33, %v1257_v32 }
 0x155   :  { %v1260_v35 = vpack.c.bf16 %v1259_v34, %v1259_v34  ;;  %1911 = vst [vmem:[#allocation21] sm:$0xff] %v1259_v34 }
 0x156   :  { %1950 = dma.vmem_to_hbm [thread:$0]  %s1946_s19, 128, %s1948_s20, [#allocation22]  }
 0x157   :  { %1317 = vmatmul.bf16.vlgmr.msrb.gmra.mxu2 %v1260_v35  ;;  %1867 = vmatmul.bf16.vlgmr.msra.gmra.mxu1 %v1260_v35 }
 0x167   :  { %1880 = vmatmul.bf16.vlgmr.msra.gmra.mxu2 %v1260_v35 }
 0x1d4   :  { %v3375_v36 = vpop.f32.mrf.mxu1 }
 0x1da   :  { %v1318_v40 = vpop.f32.mrf.mxu2 }
 0x1db   :  { %v1330_v42 = vperm.slane %v1318_v40, 0  ;;  %v1326_v43 = vrot.slane %v1318_v40, 4  ;;  %v1324_v44 = vrot.slane %v1318_v40, 2  ;;  %v1323_v45 = vrot.slane %v1318_v40, 1 }
 0x1dc   :  { %v1870_v47 = vpop.f32.mrf.mxu1  ;;  %v1327_v48 = vrot.slane %v1318_v40, 5  ;;  %v1325_v49 = vrot.slane %v1318_v40, 3  ;;  %v1328_v58 = vrot.slane %v1318_v40, 6  ;;  %v1329_v1 = vrot.slane %v1318_v40, 7 }
 0x1dd   :  { %v1346_v50 = vadd.f32 %v1330_v42, %v332_v39  ;;  %v1334_v51 = vperm.slane %v1326_v43, 0  ;;  %v1332_v52 = vperm.slane %v1324_v44, 0  ;;  %v1331_v53 = vperm.slane %v1323_v45, 0 }
 0x1de   :  { %v1335_v55 = vperm.slane %v1327_v48, 0  ;;  %v1333_v56 = vperm.slane %v1325_v49, 0  ;;  %v1336_v28 = vperm.slane %v1328_v58, 0  ;;  %v1337_v0 = vperm.slane %v1329_v1, 0 }
 0x1df   :  { %2740 = vtanh.f32 %v1346_v50  ;;  %v1350_v14 = vadd.f32 %v1334_v51, %v336_v46  ;;  %v1348_v11 = vadd.f32 %v1332_v52, %v334_v38  ;;  %v1347_v2 = vadd.f32 %v1331_v53, %v333_v54 }
 0x1e0   :  { %v1351_v61 = vadd.f32 %v1335_v55, %v337_v57  ;;  %v1349_v62 = vadd.f32 %v1333_v56, %v335_v7  ;;  %v1352_v10 = vadd.f32 %v1336_v28, %v338_v12  ;;  %v1353_v27 = vadd.f32 %v1337_v0, %v339_v13 }
 0x1e1   :  { %2742 = vtanh.f32 %v1350_v14  ;;  %v3157_v14 = vmov 0  }
 0x1e2   :  { %v1320_v59 = vpop.f32.mrf.mxu2  ;;  %2744 = vtanh.f32 %v1348_v11  ;;  %2727 = vset.pattern.permute.xlu2 %v3157_v14  ;;  %2726 = vset.pattern.permute.xlu1 %v3157_v14 }
 0x1e3   :  { %2746 = vtanh.f32 %v1347_v2  ;;  %2725 = vset.pattern.permute.xlu0 %v3157_v14 }
 0x1e4   :  { %2748 = vtanh.f32 %v1351_v61 }
 0x1e5   :  { %v2741_v3 = vpop.eup %2740  ;;  %2750 = vtanh.f32 %v1349_v62 }
 0x1e6   :  { %v1365_v4 = vmul.f32 %v2741_v3, %v2729_v60  ;;  %2752 = vtanh.f32 %v1352_v10 }
 0x1e7   :  { %v2743_v6 = vpop.eup %2742  ;;  %2754 = vtanh.f32 %v1353_v27 }
 0x1e8   :  { %v2745_v8 = vpop.eup %2744  ;;  %1373 = vadd.xlane.f32.xlu0 %v1365_v4  ;;  %v1369_v5 = vmul.f32 %v2743_v6, %v2729_v60 }
 0x1e9   :  { %v1367_v25 = vmul.f32 %v2745_v8, %v2729_v60  ;;  %v2747_v16 = vpop.eup %2746 }
 0x1ea   :  { %1381 = vadd.xlane.f32.xlu2 %v1369_v5  ;;  %v3391_v15 = vpop.f32.mrf.mxu2  ;;  %v2749_v18 = vpop.eup %2748  ;;  %v1366_v17 = vmul.f32 %v2747_v16, %v2729_v60 }
 0x1eb   :  { %1377 = vadd.xlane.f32.xlu1 %v1367_v25  ;;  %v2751_v41 = vpop.eup %2750  ;;  %v1370_v19 = vmul.f32 %v2749_v18, %v2729_v60 }
 0x1ec   :  { %v1368_v21 = vmul.f32 %v2751_v41, %v2729_v60  ;;  %v2753_v23 = vpop.eup %2752 }
 0x1ed   :  { %v2755_v24 = vpop.eup %2754  ;;  %v1371_v20 = vmul.f32 %v2753_v23, %v2729_v60 }
 0x1ee   :  { %v1372_v63 = vmul.f32 %v2755_v24, %v2729_v60 }
 0x1f0   :  { %1375 = vadd.xlane.f32.xlu0 %v1366_v17 }
 0x1f2   :  { %1383 = vadd.xlane.f32.xlu2 %v1370_v19  ;;  %v1883_v22 = vpop.f32.mrf.mxu2 }
 0x1f3   :  { %1379 = vadd.xlane.f32.xlu1 %v1368_v21 }
 0x1f8   :  { %1385 = vadd.xlane.f32.xlu0 %v1371_v20 }
 0x1fb   :  { %1387 = vadd.xlane.f32.xlu1 %v1372_v63 }
 0x25b   :  { %v1374_v9 = vpop.xlane.xlu0 %1373 }
 0x25c   :  { %v1399_v33 = vperm.slane %v1374_v9, %v3393_v31 }
 0x25d   :  { %v1382_v29 = vpop.xlane.xlu2 %1381 }
 0x25e   :  { %v1378_v30 = vpop.xlane.xlu1 %1377  ;;  %v1403_v43 = vperm.slane %v1382_v29, %v3393_v31 }
 0x25f   :  { %v1401_v35 = vperm.slane %v1378_v30, %v3393_v31 }
 0x263   :  { %v1376_v32 = vpop.xlane.xlu0 %1375 }
 0x264   :  { %v1400_v34 = vperm.slane %v1376_v32, %v3393_v31 }
 0x265   :  { %v1384_v44 = vpop.xlane.xlu2 %1383 }
 0x266   :  { %v1408_v37 = vsel %vm1407_vm8, %v1400_v34, %v1399_v33  ;;  %v1380_v39 = vpop.xlane.xlu1 %1379  ;;  %v1404_v46 = vperm.slane %v1384_v44, %v3393_v31 }
 0x267   :  { %v1402_v40 = vperm.slane %v1380_v39, %v3393_v31  ;;  %v1410_v42 = vsel %vm1409_vm9, %v1401_v35, %v1408_v37 }
 0x269   :  { %v1412_v45 = vsel %vm1411_vm10, %v1402_v40, %v1410_v42 }
 0x26a   :  { %v1414_v38 = vsel %vm1413_vm11, %v1403_v43, %v1412_v45 }
 0x26b   :  { %v1386_v47 = vpop.xlane.xlu0 %1385  ;;  %v1416_v49 = vsel %vm1415_vm12, %v1404_v46, %v1414_v38 }
 0x26c   :  { %v1405_v48 = vperm.slane %v1386_v47, %v3393_v31 }
 0x26e   :  { %v1388_v50 = vpop.xlane.xlu1 %1387  ;;  %v1418_v51 = vsel %vm1417_vm13, %v1405_v48, %v1416_v49 }
 0x26f   :  { %v1406_v52 = vperm.slane %v1388_v50, %v3393_v31 }
 0x271   :  { %v1420_v53 = vsel %vm1419_vm14, %v1406_v52, %v1418_v51 }
 0x272   :  { %v1423_v54 = vsel %vm1422_vm15, %v1420_v53, -inf }
 0x273   :  { %1424 = vmax.xlane.f32.xlu2 %v1423_v54 }
 0x2e6   :  { %v1425_v11 = vpop.xlane.xlu2 %1424 }
 0x2e7   :  { %v1429_v55 = vperm.slane %v1425_v11, 2  ;;  %v1428_v56 = vperm.slane %v1425_v11, 1  ;;  %v1427_v57 = vperm.slane %v1425_v11, 0  ;;  %v1430_v59 = vperm.slane %v1425_v11, 3 }
 0x2e8   :  { %v1431_v60 = vperm.slane %v1425_v11, 4  ;;  %v1434_v61 = vperm.slane %v1425_v11, 7  ;;  %v1432_v8 = vperm.slane %v1425_v11, 5  ;;  %v1433_v0 = vperm.slane %v1425_v11, 6 }
 0x2e9   :  { %v1445_v2 = vsub.f32 %v1378_v30, %v1429_v55  ;;  %v1444_v58 = vsub.f32 %v1376_v32, %v1428_v56  ;;  %v1443_v7 = vsub.f32 %v1374_v9, %v1427_v57  ;;  %v1446_v28 = vsub.f32 %v1380_v39, %v1430_v59 }
 0x2ea   :  { %v1447_v4 = vsub.f32 %v1382_v29, %v1431_v60  ;;  %v1450_v6 = vsub.f32 %v1388_v50, %v1434_v61  ;;  %v1448_v27 = vsub.f32 %v1384_v44, %v1432_v8  ;;  %v1449_v18 = vsub.f32 %v1386_v47, %v1433_v0  ;;  %v2492_v8 = vld [vmem:[#allocation19 + $0x78] sm:$0xf0]  ;;  %v2482_v0 = vld [vmem:[#allocation19 + $0x60] sm:$0xf] }
 0x2eb   :  { %v1455_v62 = vmul.f32 1.442695, %v1445_v2  ;;  %v1453_v1 = vmul.f32 1.442695, %v1444_v58  ;;  %v1451_v3 = vmul.f32 1.442695, %v1443_v7 }
 0x2ec   :  { %v1457_v12 = vmul.f32 1.442695, %v1446_v28  ;;  %v1459_v5 = vmul.f32 1.442695, %v1447_v4  ;;  %v1465_v10 = vmul.f32 1.442695, %v1450_v6 }
 0x2ed   :  { %2756 = vpow2.f32 %v1455_v62  ;;  %v1461_v41 = vmul.f32 1.442695, %v1448_v27  ;;  %v1463_v17 = vmul.f32 1.442695, %v1449_v18  ;;  %v2490_v28 = vld [vmem:[#allocation19 + $0x70] sm:$0xf] }
 0x2ee   :  { %2758 = vpow2.f32 %v1453_v1  ;;  %v2703_v4 = vld [vmem:[#allocation19 + $0x74] sm:$0xf0]  ;;  %v2702_v6 = vld [vmem:[#allocation19 + $0x74] sm:$0xf]  ;;  %v2474_v18 = vld [vmem:[#allocation19 + $0x50] sm:$0xf] }
 0x2ef   :  { %2760 = vpow2.f32 %v1451_v3 }
 0x2f0   :  { %2762 = vpow2.f32 %v1457_v12  ;;  %v2491_v12 = vor.u32 %v2703_v4, %v2490_v28  ;;  %v2434_v28 = vld [vmem:[#allocation19] sm:$0xf]  ;;  %v2689_v4 = vld [vmem:[#allocation19 + $0x4] sm:$0xf0] }
 0x2f1   :  { %2764 = vpow2.f32 %v1459_v5  ;;  %v2495_v5 = vor.u32 %v2702_v6, %v2492_v8  ;;  %v2688_v8 = vld [vmem:[#allocation19 + $0x4] sm:$0xf] }
 0x2f2   :  { %2766 = vpow2.f32 %v1465_v10  ;;  %1753 = vmatpush.bf16.msrb.mxu3 %v2491_v12  ;;  %v2700_v10 = vld [vmem:[#allocation19 + $0x64] sm:$0xf] }
 0x2f3   :  { %v3411_v25 = vpop.eup %2756  ;;  %2768 = vpow2.f32 %v1461_v41  ;;  %1766 = vmatpush.bf16.msrb.mxu0 %v2495_v5  ;;  %v2699_v41 = vld [vmem:[#allocation19 + $0x54] sm:$0xf0]  ;;  %v2436_v5 = vld [vmem:[#allocation19 + $0x8] sm:$0xf0] }
 0x2f4   :  { %v2759_v13 = vpop.eup %2758  ;;  %1482 = vperm.xlu2 %2727, %v3411_v25   ;;  %2770 = vpow2.f32 %v1463_v17  ;;  %v2698_v17 = vld [vmem:[#allocation19 + $0x54] sm:$0xf] }
 0x2f5   :  { %v2761_v16 = vpop.eup %2760  ;;  %1479 = vperm.xlu1 %2726, %v2759_v13  }
 0x2f6   :  { %1476 = vperm.xlu0 %2725, %v2761_v16   ;;  %v2763_v19 = vpop.eup %2762 }
 0x2f7   :  { %v2765_v21 = vpop.eup %2764 }
 0x2f8   :  { %v2767_v22 = vpop.eup %2766 }
 0x2f9   :  { %v2769_v23 = vpop.eup %2768 }
 0x2fa   :  { %v2771_v24 = vpop.eup %2770 }
 0x2fc   :  { %1485 = vperm.xlu2 %2727, %v2763_v19  }
 0x2fd   :  { %1488 = vperm.xlu1 %2726, %v2765_v21  }
 0x2fe   :  { %1497 = vperm.xlu0 %2725, %v2767_v22  }
 0x304   :  { %1491 = vperm.xlu2 %2727, %v2769_v23  }
 0x305   :  { %1494 = vperm.xlu1 %2726, %v2771_v24  }
 0x34e   :  { %v1483_v20 = vpop.permute.xlu2 %1482 }
 0x34f   :  { %v1501_v34 = vperm.slane %v1483_v20, %v3393_v31  ;;  %v2696_v20 = vld [vmem:[#allocation19 + $0x44] sm:$0xf] }
 0x356   :  { %v1486_v26 = vpop.permute.xlu2 %1485 }
 0x357   :  { %v1502_v39 = vperm.slane %v1486_v26, %v3393_v31 }
 0x35e   :  { %v1492_v40 = vpop.permute.xlu2 %1491 }
 0x35f   :  { %v1504_v45 = vperm.slane %v1492_v40, %v3393_v31  ;;  %v2458_v40 = vld [vmem:[#allocation19 + $0x30] sm:$0xf] }
 0x367   :  { %v1480_v63 = vpop.permute.xlu1 %1479 }
 0x368   :  { %v1477_v9 = vpop.permute.xlu0 %1476  ;;  %v1500_v29 = vperm.slane %v1480_v63, %v3393_v31 }
 0x369   :  { %v1499_v30 = vperm.slane %v1477_v9, %v3393_v31 }
 0x36b   :  { %v1507_v32 = vsel %vm1407_vm8, %v1500_v29, %v1499_v30  ;;  %v2468_v29 = vld [vmem:[#allocation19 + $0x48] sm:$0xf0] }
 0x36c   :  { %v1508_v35 = vsel %vm1409_vm9, %v1501_v34, %v1507_v32  ;;  %v2780_v30 = vld [vmem:[#allocation8 + $0x8] sm:$0xff] }
 0x36d   :  { %v1509_v42 = vsel %vm1411_vm10, %v1502_v39, %v1508_v35  ;;  %v2471_v35 = vor.u32 %v2696_v20, %v2468_v29 }
 0x36f   :  { %v1489_v33 = vpop.permute.xlu1 %1488 }
 0x370   :  { %v1503_v37 = vperm.slane %v1489_v33, %v3393_v31  ;;  %v1498_v44 = vpop.permute.xlu0 %1497  ;;  %v2781_v33 = vld [vmem:[#allocation8] sm:$0xff] }
 0x371   :  { %v1506_v47 = vperm.slane %v1498_v44, %v3393_v31  ;;  %v2694_v44 = vld [vmem:[#allocation19 + $0x34] sm:$0xf] }
 0x372   :  { %v1510_v43 = vsel %vm1413_vm11, %v1503_v37, %v1509_v42  ;;  %v2695_v42 = vld [vmem:[#allocation19 + $0x34] sm:$0xf0] }
 0x373   :  { %v1511_v48 = vsel %vm1415_vm12, %v1504_v45, %v1510_v43  ;;  %v2459_v43 = vor.u32 %v2695_v42, %v2458_v40  ;;  %v2460_v45 = vld [vmem:[#allocation19 + $0x38] sm:$0xf0] }
 0x377   :  { %v1495_v38 = vpop.permute.xlu1 %1494 }
 0x378   :  { %v1505_v46 = vperm.slane %v1495_v38, %v3393_v31 }
 0x37a   :  { %v1512_v49 = vsel %vm1417_vm13, %v1505_v46, %v1511_v48  ;;  %v2450_v48 = vld [vmem:[#allocation19 + $0x20] sm:$0xf] }
 0x37b   :  { %v1513_v50 = vsel %vm1419_vm14, %v1506_v47, %v1512_v49  ;;  %v2463_v47 = vor.u32 %v2694_v44, %v2460_v45  ;;  %v2693_v49 = vld [vmem:[#allocation19 + $0x24] sm:$0xf0]  ;;  %v2786_v45 = vld [vmem:[#allocation8 + $0x38] sm:$0xff] }
 0x37c   :  { %v1515_v51 = vsel %vm1422_vm15, %v1513_v50, 0.0 }
 0x37d   :  { %1516 = vadd.xlane.f32.xlu2 %v1515_v51 }
 0x3f0   :  { %v1517_v52 = vpop.xlane.xlu2 %1516 }
 0x3f1   :  { %2772 = vrcp.f32 %v1517_v52  ;;  %v2451_v52 = vor.u32 %v2693_v49, %v2450_v48  ;;  %v2787_v49 = vld [vmem:[#allocation8 + $0x30] sm:$0xff] }
 0x3f7   :  { %v2773_v53 = vpop.eup %2772 }
 0x3f8   :  { %v1521_v54 = vperm.slane %v2773_v53, 1  ;;  %v1520_v14 = vperm.slane %v2773_v53, 0  ;;  %v1523_v56 = vperm.slane %v2773_v53, 3  ;;  %v1522_v31 = vperm.slane %v2773_v53, 2 }
 0x3f9   :  { %v1525_v58 = vperm.slane %v2773_v53, 5  ;;  %v1524_v7 = vperm.slane %v2773_v53, 4  ;;  %v1527_v61 = vperm.slane %v2773_v53, 7  ;;  %v1526_v62 = vperm.slane %v2773_v53, 6  ;;  %v2692_v53 = vld [vmem:[#allocation19 + $0x24] sm:$0xf] }
 0x3fa   :  { %v1537_v11 = vmul.f32 %v2759_v13, %v1521_v54  ;;  %v1536_v55 = vmul.f32 %v2761_v16, %v1520_v14  ;;  %v1539_v57 = vmul.f32 %v2763_v19, %v1523_v56  ;;  %v1538_v2 = vmul.f32 %v3411_v25, %v1522_v31  ;;  %v2701_v25 = vld [vmem:[#allocation19 + $0x64] sm:$0xf0]  ;;  %v2484_v16 = vld [vmem:[#allocation19 + $0x68] sm:$0xf0]  ;;  %v2783_v31 = vld [vmem:[#allocation8 + $0x10] sm:$0xff] }
 0x3fb   :  { %v1541_v59 = vmul.f32 %v2769_v23, %v1525_v58  ;;  %v1540_v60 = vmul.f32 %v2765_v21, %v1524_v7  ;;  %v1543_v1 = vmul.f32 %v2767_v22, %v1527_v61  ;;  %v1542_v3 = vmul.f32 %v2771_v24, %v1526_v62  ;;  %v2476_v21 = vld [vmem:[#allocation19 + $0x58] sm:$0xf0]  ;;  %v2466_v23 = vld [vmem:[#allocation19 + $0x40] sm:$0xf]  ;;  %v2697_v24 = vld [vmem:[#allocation19 + $0x44] sm:$0xf0] }
 0x3fc   :  { %1551 = vperm.xlu0 %2725, %v1537_v11   ;;  %1546 = vperm.xlu1 %2726, %v1536_v55   ;;  %v2483_v13 = vor.u32 %v2701_v25, %v2482_v0  ;;  %v2487_v27 = vor.u32 %v2700_v10, %v2484_v16  ;;  %v2475_v19 = vor.u32 %v2699_v41, %v2474_v18  ;;  %v2452_v54 = vld [vmem:[#allocation19 + $0x28] sm:$0xf0]  ;;  %v2782_v55 = vld [vmem:[#allocation8 + $0x18] sm:$0xff]  ;;  %v2442_v58 = vld [vmem:[#allocation19 + $0x10] sm:$0xf] }
 0x3fd   :  { %v2479_v22 = vor.u32 %v2698_v17, %v2476_v21  ;;  %v2467_v26 = vor.u32 %v2697_v24, %v2466_v23  ;;  %v2691_v7 = vld [vmem:[#allocation19 + $0x14] sm:$0xf0]  ;;  %v2444_v62 = vld [vmem:[#allocation19 + $0x18] sm:$0xf0]  ;;  %v2435_v10 = vor.u32 %v2689_v4, %v2434_v28  ;;  %v2439_v41 = vor.u32 %v2688_v8, %v2436_v5  ;;  %v2784_v17 = vld [vmem:[#allocation8 + $0x28] sm:$0xff] }
 0x3fe   :  { %1754 = vmatpush.bf16.msrb.mxu3 %v2483_v13  ;;  %1767 = vmatpush.bf16.msrb.mxu0 %v2487_v27  ;;  %v2785_v24 = vld [vmem:[#allocation8 + $0x20] sm:$0xff] }
 0x402   :  { %1755 = vmatpush.bf16.msrb.mxu3 %v2475_v19  ;;  %1768 = vmatpush.bf16.msrb.mxu0 %v2479_v22 }
 0x404   :  { %1561 = vperm.xlu0 %2725, %v1539_v57   ;;  %1556 = vperm.xlu1 %2726, %v1538_v2   ;;  %v2455_v2 = vor.u32 %v2692_v53, %v2452_v54 }
 0x406   :  { %1756 = vmatpush.bf16.msrb.mxu3 %v2467_v26  ;;  %1769 = vmatpush.bf16.msrb.mxu0 %v2471_v35 }
 0x40a   :  { %1757 = vmatpush.bf16.msrb.mxu3 %v2459_v43  ;;  %1770 = vmatpush.bf16.msrb.mxu0 %v2463_v47 }
 0x40c   :  { %1571 = vperm.xlu0 %2725, %v1541_v59   ;;  %1566 = vperm.xlu1 %2726, %v1540_v60   ;;  %v2690_v59 = vld [vmem:[#allocation19 + $0x14] sm:$0xf] }
 0x40e   :  { %1758 = vmatpush.bf16.msrb.mxu3 %v2451_v52  ;;  %1771 = vmatpush.bf16.msrb.mxu0 %v2455_v2 }
 0x414   :  { %1581 = vperm.xlu0 %2725, %v1543_v1   ;;  %1576 = vperm.xlu1 %2726, %v1542_v3   ;;  %v2443_v1 = vor.u32 %v2691_v7, %v2442_v58  ;;  %v2447_v3 = vor.u32 %v2690_v59, %v2444_v62 }
 0x416   :  { %1759 = vmatpush.bf16.msrb.mxu3 %v2443_v1  ;;  %1772 = vmatpush.bf16.msrb.mxu0 %v2447_v3 }
 0x41a   :  { %1760 = vmatpush.bf16.msrb.mxu3 %v2435_v10  ;;  %1773 = vmatpush.bf16.msrb.mxu0 %v2439_v41 }
 0x46e   :  { %v1552_v63 = vpop.permute.xlu0 %1551  ;;  %v1547_v9 = vpop.permute.xlu1 %1546 }
 0x46f   :  { %v1585_v32 = vmul.f32 %v2780_v30, %v1552_v63  ;;  %v1584_v34 = vmul.f32 %v2781_v33, %v1547_v9 }
 0x471   :  { %v1598_v37 = vrot.slane %v1585_v32, 4  ;;  %v1592_v39 = vrot.slane %v1584_v34, 4 }
 0x473   :  { %v1599_v38 = vadd.f32 %v1598_v37, %v1585_v32  ;;  %v1593_v46 = vadd.f32 %v1592_v39, %v1584_v34 }
 0x475   :  { %v1600_v14 = vrot.slane %v1599_v38, 2  ;;  %v1594_v11 = vrot.slane %v1593_v46, 2 }
 0x476   :  { %v1562_v50 = vpop.permute.xlu0 %1561  ;;  %v1557_v51 = vpop.permute.xlu1 %1556 }
 0x477   :  { %v1587_v56 = vmul.f32 %v2782_v55, %v1562_v50  ;;  %v1586_v57 = vmul.f32 %v2783_v31, %v1557_v51  ;;  %v1601_v0 = vadd.f32 %v1600_v14, %v1599_v38  ;;  %v1595_v25 = vadd.f32 %v1594_v11, %v1593_v46 }
 0x479   :  { %v1610_v60 = vrot.slane %v1587_v56, 4  ;;  %v1604_v61 = vrot.slane %v1586_v57, 4  ;;  %v1602_v21 = vrot.slane %v1601_v0, 1  ;;  %v1596_v22 = vrot.slane %v1595_v25, 1 }
 0x47b   :  { %v1611_v6 = vadd.f32 %v1610_v60, %v1587_v56  ;;  %v1605_v12 = vadd.f32 %v1604_v61, %v1586_v57  ;;  %v1603_v32 = vadd.f32 %v1602_v21, %v1601_v0  ;;  %v1597_v33 = vadd.f32 %v1596_v22, %v1595_v25 }
 0x47d   :  { %v1612_v13 = vrot.slane %v1611_v6, 2  ;;  %v1606_v16 = vrot.slane %v1605_v12, 2  ;;  %v1641_v46 = vpack.c.bf16 %v1603_v32, %v1603_v32  ;;  %v1640_v47 = vpack.c.bf16 %v1597_v33, %v1597_v33 }
 0x47e   :  { %v1572_v27 = vpop.permute.xlu0 %1571  ;;  %v1567_v18 = vpop.permute.xlu1 %1566  ;;  %v1920_v58 = vsel %vm1407_vm8, %v1603_v32, %v1597_v33 }
 0x47f   :  { %v1589_v19 = vmul.f32 %v2784_v17, %v1572_v27  ;;  %v1607_v23 = vadd.f32 %v1606_v16, %v1605_v12  ;;  %v1588_v20 = vmul.f32 %v2785_v24, %v1567_v18  ;;  %v1613_v63 = vadd.f32 %v1612_v13, %v1611_v6 }
 0x480   :  { %v1657_v56 = vunpack.c.l.b16 %v1641_v46  ;;  %v1656_v31 = vunpack.c.l.b16 %v1640_v47 }
 0x481   :  { %v1622_v9 = vrot.slane %v1589_v19, 4  ;;  %v1608_v26 = vrot.slane %v1607_v23, 1  ;;  %v1616_v29 = vrot.slane %v1588_v20, 4  ;;  %v1614_v35 = vrot.slane %v1613_v63, 1 }
 0x482   :  { %v1664_v4 = vsel %vm1407_vm8, %v1657_v56, %v1656_v31 }
 0x483   :  { %v1623_v30 = vadd.f32 %v1622_v9, %v1589_v19  ;;  %v1617_v34 = vadd.f32 %v1616_v29, %v1588_v20  ;;  %v1609_v39 = vadd.f32 %v1608_v26, %v1607_v23  ;;  %v1615_v51 = vadd.f32 %v1614_v35, %v1613_v63 }
 0x485   :  { %v1624_v37 = vrot.slane %v1623_v30, 2  ;;  %v1618_v40 = vrot.slane %v1617_v34, 2  ;;  %v1642_v54 = vpack.c.bf16 %v1609_v39, %v1609_v39  ;;  %v1643_v7 = vpack.c.bf16 %v1615_v51, %v1615_v51 }
 0x486   :  { %v1582_v42 = vpop.permute.xlu0 %1581  ;;  %v1577_v43 = vpop.permute.xlu1 %1576  ;;  %v1921_v62 = vsel %vm1409_vm9, %v1609_v39, %v1920_v58 }
 0x487   :  { %v1625_v44 = vadd.f32 %v1624_v37, %v1623_v30  ;;  %v1591_v38 = vmul.f32 %v2786_v45, %v1582_v42  ;;  %v1619_v48 = vadd.f32 %v1618_v40, %v1617_v34  ;;  %v1590_v50 = vmul.f32 %v2787_v49, %v1577_v43  ;;  %v519_v34 = vld [vmem:[%s3474_s15] sm:$0x3] }
 0x488   :  { %v1658_v61 = vunpack.c.l.b16 %v1642_v54  ;;  %v1659_v12 = vunpack.c.l.b16 %v1643_v7  ;;  %v1922_v5 = vsel %vm1411_vm10, %v1615_v51, %v1921_v62  ;;  %v1887_v37 = vperm.slane %v519_v34, 1 }
 0x489   :  { %v1626_v52 = vrot.slane %v1625_v44, 1  ;;  %v1634_v53 = vrot.slane %v1591_v38, 4  ;;  %v1620_v14 = vrot.slane %v1619_v48, 1  ;;  %v1628_v11 = vrot.slane %v1590_v50, 4 }
 0x48a   :  { %v1665_v25 = vsel %vm1409_vm9, %v1658_v61, %v1664_v4  ;;  %v1886_v39 = vperm.slane %v519_v34, 0 }
 0x48b   :  { %v1635_v55 = vadd.f32 %v1634_v53, %v1591_v38  ;;  %v1621_v57 = vadd.f32 %v1620_v14, %v1619_v48  ;;  %v1629_v2 = vadd.f32 %v1628_v11, %v1590_v50  ;;  %v1627_v59 = vadd.f32 %v1626_v52, %v1625_v44 }
 0x48c   :  { %v1666_v17 = vsel %vm1411_vm10, %v1659_v12, %v1665_v25 }
 0x48d   :  { %v1636_v60 = vrot.slane %v1635_v55, 2  ;;  %v1644_v1 = vpack.c.bf16 %v1621_v57, %v1621_v57  ;;  %v1630_v3 = vrot.slane %v1629_v2, 2  ;;  %v1645_v8 = vpack.c.bf16 %v1627_v59, %v1627_v59 }
 0x48e   :  { %v1923_v13 = vsel %vm1413_vm11, %v1621_v57, %v1922_v5 }
 0x48f   :  { %v1637_v28 = vadd.f32 %v1636_v60, %v1635_v55  ;;  %v1631_v6 = vadd.f32 %v1630_v3, %v1629_v2  ;;  %v1660_v10 = vunpack.c.l.b16 %v1644_v1  ;;  %v1661_v41 = vunpack.c.l.b16 %v1645_v8 }
 0x490   :  { %v1924_v21 = vsel %vm1415_vm12, %v1627_v59, %v1923_v13 }
 0x491   :  { %v1638_v0 = vrot.slane %v1637_v28, 1  ;;  %v1632_v16 = vrot.slane %v1631_v6, 1  ;;  %v1667_v22 = vsel %vm1413_vm11, %v1660_v10, %v1666_v17 }
 0x492   :  { %v1668_v26 = vsel %vm1415_vm12, %v1661_v41, %v1667_v22 }
 0x493   :  { %v1639_v27 = vadd.f32 %v1638_v0, %v1637_v28  ;;  %v1633_v18 = vadd.f32 %v1632_v16, %v1631_v6 }
 0x495   :  { %v1647_v19 = vpack.c.bf16 %v1639_v27, %v1639_v27  ;;  %v1646_v23 = vpack.c.bf16 %v1633_v18, %v1633_v18  ;;  %v1925_v24 = vsel %vm1417_vm13, %v1633_v18, %v1924_v21 }
 0x496   :  { %v1926_v63 = vsel %vm1419_vm14, %v1639_v27, %v1925_v24 }
 0x497   :  { %v1663_v20 = vunpack.c.l.b16 %v1647_v19  ;;  %v1662_v9 = vunpack.c.l.b16 %v1646_v23  ;;  %1928 = vst [vmem:[#allocation23] sm:$0xff] %v1926_v63 }
 0x498   :  { %1961 = dma.vmem_to_hbm [thread:$0]  %s1957_s2, 128, %s1959_s0, [#allocation22]  }
 0x499   :  { %v1669_v29 = vsel %vm1417_vm13, %v1662_v9, %v1668_v26 }
 0x49a   :  { %v1670_v30 = vsel %vm1419_vm14, %v1663_v20, %v1669_v29 }
 0x49b   :  { %v1671_v32 = vpack.c.b16 %v1670_v30, %v1670_v30 }
 0x49d   :  { %1761 = vmatmul.bf16.vlgmr.msrb.gmra.mxu3 %v1671_v32  ;;  %1774 = vmatmul.bf16.vlgmr.msrb.gmra.mxu0 %v1671_v32 }
 0x51a   :  { %v1775_v33 = vpop.f32.mrf.mxu0 }
 0x51b   :  { %v1882_v35 = vadd.f32 %v3391_v15, %v1775_v33 }
 0x51d   :  { %v1891_v44 = vadd.f32 %v1887_v37, %v1882_v35 }
 0x520   :  { %v1762_v40 = vpop.f32.mrf.mxu3 }
 0x521   :  { %v1869_v42 = vadd.f32 %v3375_v36, %v1762_v40 }
 0x522   :  { %v1777_v43 = vpop.f32.mrf.mxu0 }
 0x523   :  { %v1890_v45 = vadd.f32 %v1886_v39, %v1869_v42 }
 0x525   :  { %v1892_v38 = vmax.f32 %v1890_v45, %v1891_v44 }
 0x527   :  { %1893 = vmax.xlane.f32.xlu1 %v1892_v38 }
 0x528   :  { %v1764_v46 = vpop.f32.mrf.mxu3 }
 0x59a   :  { %v1894_v47 = vpop.xlane.xlu1 %1893 }
 0x59b   :  { %v1895_v48 = vsub.f32 %v1890_v45, %v1894_v47  ;;  %v1896_v49 = vsub.f32 %v1891_v44, %v1894_v47 }
 0x59d   :  { %v1897_v50 = vmul.f32 1.442695, %v1895_v48  ;;  %v1899_v51 = vmul.f32 1.442695, %v1896_v49 }
 0x59f   :  { %2774 = vpow2.f32 %v1897_v50 }
 0x5a0   :  { %2776 = vpow2.f32 %v1899_v51 }
 0x5a5   :  { %v2775_v52 = vpop.eup %2774 }
 0x5a6   :  { %v2777_v15 = vpop.eup %2776 }
 0x5a7   :  { %v1901_v53 = vadd.f32 %v2777_v15, %v2775_v52 }
 0x5a9   :  { %1902 = vadd.xlane.f32.xlu0 %v1901_v53 }
 0x61c   :  { %v1903_v36 = vpop.xlane.xlu0 %1902 }
 0x61d   :  { %2778 = vlog2.f32 %v1903_v36 }
 0x623   :  { %v2779_v54 = vpop.eup %2778 }
 0x624   :  { %v1905_v14 = vmul.f32 0.6931472, %v2779_v54 }
 0x626   :  { %v1906_v11 = vadd.f32 %v1905_v14, %v1894_v47 }
 0x628   :  { %v1907_v55 = vsub.f32 %v1890_v45, %v1906_v11  ;;  %v1908_v56 = vsub.f32 %v1891_v44, %v1906_v11 }
 0x62a   :  { %1909 = vst [vmem:[#allocation20] sm:$0xff] %v1907_v55 }
 0x62b   :  { %1910 = vst [vmem:[#allocation20 + $0x8] sm:$0xff] %v1908_v56 }
 0x62c   :  { %1939 = dma.vmem_to_hbm [thread:$0]  %s1935_s6, 256, %s1937_s3, [#allocation4]  }
 0x62d   :  { %3136 = dma.done.wait [#allocation4], 256  }
 0x62e   :  { %3137 = vsyncadd [#allocation4], 4294967040 }
 0x62f   :  { %3138 = dma.done.wait [#allocation22], 256  }
 0x630   :  { %3139 = vsyncadd [#allocation22], 4294967040 }
 0x631   :  { %1974 = vsyncpa [#allocation3], 1 }
 0x632   :  { %1975 = vsyncpa [#allocation6], 1 }
 0x633   :  { %1976 = vsyncpa [#allocation9], 1 }
 0x634   :  { %1977 = vsyncpa [#allocation12], 1 }
 0x635   :  { %1978 = vsyncpa [#allocation15], 1 }
 0x636   :  { %1979 = vsyncpa [#allocation18], 1 }
 0x637   :  { %1980 = vsyncpa [#allocation4], 1 }
 0x638   :  { %1981 = vsyncpa [#allocation22], 1 }

</bundles_post_ra>
